<compile_context>
chip_gen: v6e
topology: v6e:2x2x1
jax: 0.10.0
libtpu: 0.0.40
codegen_flags: <defaults>
</compile_context>

<pallas_src>
import math

import jax
import jax.numpy as jnp
import numpy as np
from jax.experimental import pallas as pl
from jax.experimental.pallas import tpu as pltpu


# ----------------------------- in-kernel helpers -----------------------------

_INV_SQRT2 = 1.0 / math.sqrt(2.0)


def _gelu(x):
    # Exact (erf-based) GELU, matching torch.nn.GELU default.
    return 0.5 * x * (1.0 + jax.lax.erf(x * _INV_SQRT2))


def _layernorm(x, w, b, eps=1e-5):
    # One-pass LayerNorm over the last axis (biased variance), eps=1e-5
    # matches nn.LayerNorm.  mean(x) and mean(x*x) are independent reduces.
    mu = jnp.mean(x, axis=-1, keepdims=True)
    ms = jnp.mean(x * x, axis=-1, keepdims=True)
    var = ms - mu * mu
    return (x - mu) * jax.lax.rsqrt(var + eps) * w + b


# --------------------------------- fused kernel -------------------------------

def mixer_kernel(
    patches_ref, pw_ref, pb_ref,
    ln1w_ref, ln1b_ref, w1_ref, b1_ref, w2_ref, b2_ref,
    ln2w_ref, ln2b_ref, w3_ref, b3_ref, w4_ref, b4_ref,
    lnw_ref, lnb_ref, avg_ref, hw_ref, hb_ref,
    o_ref,
    x_scr,
):
    # Grid: (batch_tile index [parallel], depth [arbitrary]).
    # patches_ref: (bt*N, K)      pw: (K, D)         pb: (1, D)
    # ln*:         (1, 1, D)
    # w1: (1, tok, N)  b1: (1, tok, 1)   w2: (1, N, tok)  b2: (1, N, 1)
    # w3: (1, D, C)    b3: (1, 1, C)     w4: (1, C, D)    b4: (1, 1, D)
    # lnw/lnb: (1, D)  avg: (bt, bt*N)   hw: (D, NCpad)   hb: (1, NCpad)
    # o_ref: (bt, NCpad)   x_scr: (bt*N, D) f32 activation carried over depth.
    d = pl.program_id(1)
    last = pl.num_programs(1) - 1
    cdt = pw_ref.dtype                       # matmul operand dtype (bf16/f32)
    n = w2_ref.shape[1]                      # tokens per sample
    bt = x_scr.shape[0] // n                 # samples in this batch tile

    # ---- patch embedding (first depth step only) ----
    @pl.when(d == 0)
    def _patch_embed():
        x_scr[...] = (
            jnp.dot(patches_ref[...], pw_ref[...],
                    preferred_element_type=jnp.float32)
            + pb_ref[...]
        )

    x = x_scr[...]                                            # (bt*N, D) f32

    # ---- token mixing (per sample, transpose-free: weights applied on left) --
    y = _layernorm(x, ln1w_ref[0], ln1b_ref[0]).astype(cdt)
    w1 = w1_ref[0]
    b1 = b1_ref[0]
    w2 = w2_ref[0]
    b2 = b2_ref[0]
    for s in range(bt):                       # bt is static -> fully unrolled
        ys = y[s * n:(s + 1) * n, :]                          # (N, D)
        h = _gelu(jnp.dot(w1, ys, preferred_element_type=jnp.float32) + b1)
        x_scr[pl.ds(s * n, n), :] = (
            x[s * n:(s + 1) * n, :]
            + jnp.dot(w2, h.astype(cdt), preferred_element_type=jnp.float32)
            + b2
        )
    x = x_scr[...]

    # ---- channel mixing ----
    y = _layernorm(x, ln2w_ref[0], ln2b_ref[0]).astype(cdt)
    h = _gelu(jnp.dot(y, w3_ref[0], preferred_element_type=jnp.float32)
              + b3_ref[0])
    x = (x
         + jnp.dot(h.astype(cdt), w4_ref[0], preferred_element_type=jnp.float32)
         + b4_ref[0])
    x_scr[...] = x

    # ---- head: LN -> per-sample token mean (matmul) -> classifier ----
    @pl.when(d == last)
    def _head():
        yh = _layernorm(x, lnw_ref[...], lnb_ref[...]).astype(cdt)
        m = jnp.dot(avg_ref[...], yh, preferred_element_type=jnp.float32)  # (bt, D)
        o_ref[...] = (
            jnp.dot(m.astype(cdt), hw_ref[...], preferred_element_type=jnp.float32)
            + hb_ref[...]
        )


# ------------------------- one-time parameter packing -------------------------

def pack_params(params, batch_tile, compute_dtype=jnp.bfloat16):
    """Pack weights ONCE (outside jit) into depth-stacked / pre-transposed
    layouts. Token-mix weights are stored transposed so the kernel applies
    them on the left (no in-kernel transpose). Matmul operands are cast to
    `compute_dtype`; LN params and biases stay f32."""
    f32 = jnp.float32
    cdt = compute_dtype
    blocks = params["blocks"]
    D = params["patch_w"].shape[1]
    N = blocks[0]["w1t"].shape[0]
    num_classes = params["head_wt"].shape[1]
    ncpad = ((num_classes + 127) // 128) * 128   # lane-dense classifier width

    hw = jnp.zeros((D, ncpad), f32).at[:, :num_classes].set(params["head_wt"])
    hb = jnp.zeros((1, ncpad), f32).at[:, :num_classes].set(params["head_b"])
    # Per-sample token-mean expressed as a tiny (bt, bt*N) matmul.
    avg = jnp.kron(jnp.eye(batch_tile, dtype=f32),
                   jnp.full((1, N), 1.0 / N, f32))

    return dict(
        pw=params["patch_w"].astype(cdt),
        pb=params["patch_b"].astype(f32),
        ln1w=jnp.stack([b["ln1w"] for b in blocks]).astype(f32),          # (depth,1,D)
        ln1b=jnp.stack([b["ln1b"] for b in blocks]).astype(f32),
        w1=jnp.stack([b["w1t"].T for b in blocks]).astype(cdt),           # (depth,tok,N)
        b1=jnp.stack([b["b1"].reshape(-1, 1) for b in blocks]).astype(f32),   # (depth,tok,1)
        w2=jnp.stack([b["w2t"].T for b in blocks]).astype(cdt),           # (depth,N,tok)
        b2=jnp.stack([b["b2"].reshape(-1, 1) for b in blocks]).astype(f32),   # (depth,N,1)
        ln2w=jnp.stack([b["ln2w"] for b in blocks]).astype(f32),
        ln2b=jnp.stack([b["ln2b"] for b in blocks]).astype(f32),
        w3=jnp.stack([b["w3t"] for b in blocks]).astype(cdt),             # (depth,D,C)
        b3=jnp.stack([b["b3"] for b in blocks]).astype(f32),              # (depth,1,C)
        w4=jnp.stack([b["w4t"] for b in blocks]).astype(cdt),             # (depth,C,D)
        b4=jnp.stack([b["b4"] for b in blocks]).astype(f32),              # (depth,1,D)
        lnw=params["lnw"].astype(f32),
        lnb=params["lnb"].astype(f32),
        avg=avg.astype(cdt),
        hw=hw.astype(cdt),
        hb=hb,
    )


# ------------------------------ pallas wrapper --------------------------------

def extract_patches(x, p):
    # x: (B, C, H, W) -> (B, N, C*p*p); patch order (h, w), flatten (C, ph, pw)
    B, C, H, W = x.shape
    x = x.reshape(B, C, H // p, p, W // p, p)
    x = x.transpose(0, 2, 4, 1, 3, 5)
    return x.reshape(B, (H // p) * (W // p), C * p * p)


def mlp_mixer_forward(x, packed, patch_size, num_classes):
    B = x.shape[0]
    patches = extract_patches(x, patch_size)                  # (B, N, K)
    _, N, K = patches.shape
    depth, tok = packed["w1"].shape[0], packed["w1"].shape[1]
    D = packed["pw"].shape[1]
    C = packed["w3"].shape[2]
    bt = packed["avg"].shape[0]                               # samples / grid step
    ncpad = packed["hw"].shape[1]
    assert B % bt == 0, "batch must be divisible by the batch tile"

    cdt = packed["pw"].dtype
    patches2d = patches.reshape(B * N, K).astype(cdt)

    def const_spec(shape):                                    # loaded once
        nd = len(shape)
        return pl.BlockSpec(shape, lambda b, d, _n=nd: (0,) * _n)

    def depth_spec(r, c):                                     # streamed per depth
        return pl.BlockSpec((1, r, c), lambda b, d: (d, 0, 0))

    in_specs = [
        pl.BlockSpec((bt * N, K), lambda b, d: (b, 0)),       # patches (per tile)
        const_spec((K, D)), const_spec((1, D)),               # pw, pb
        depth_spec(1, D), depth_spec(1, D),                   # ln1w, ln1b
        depth_spec(tok, N), depth_spec(tok, 1),               # w1, b1
        depth_spec(N, tok), depth_spec(N, 1),                 # w2, b2
        depth_spec(1, D), depth_spec(1, D),                   # ln2w, ln2b
        depth_spec(D, C), depth_spec(1, C),                   # w3, b3
        depth_spec(C, D), depth_spec(1, D),                   # w4, b4
        const_spec((1, D)), const_spec((1, D)),               # lnw, lnb
        const_spec((bt, bt * N)),                             # avg
        const_spec((D, ncpad)), const_spec((1, ncpad)),       # hw, hb
    ]

    operands = (patches2d, packed["pw"], packed["pb"],
                packed["ln1w"], packed["ln1b"], packed["w1"], packed["b1"],
                packed["w2"], packed["b2"], packed["ln2w"], packed["ln2b"],
                packed["w3"], packed["b3"], packed["w4"], packed["b4"],
                packed["lnw"], packed["lnb"], packed["avg"],
                packed["hw"], packed["hb"])

    out = pl.pallas_call(
        mixer_kernel,
        out_shape=jax.ShapeDtypeStruct((B, ncpad), jnp.float32),
        grid=(B // bt, depth),
        in_specs=in_specs,
        out_specs=pl.BlockSpec((bt, ncpad), lambda b, d: (b, 0)),
        scratch_shapes=[pltpu.VMEM((bt * N, D), jnp.float32)],
        compiler_params=pltpu.CompilerParams(
            dimension_semantics=("parallel", "arbitrary"),
            vmem_limit_bytes=32 * 1024 * 1024,
        ),
    )(*operands)
    return out[:, :num_classes]


# ------------------------------ params / reference ----------------------------

def init_params(key, in_channels, dim, patch_size, num_patch, depth,
                token_dim, channel_dim, num_classes):
    K = in_channels * patch_size * patch_size

    def lin(k, fan_in, fan_out):
        kw, kb = jax.random.split(k)
        w = jax.random.normal(kw, (fan_in, fan_out), jnp.float32) * 0.02
        b = jax.random.normal(kb, (1, fan_out), jnp.float32) * 0.02
        return w, b

    keys = jax.random.split(key, depth + 2)
    patch_w, patch_b = lin(keys[0], K, dim)

    blocks = []
    for d in range(depth):
        bk = jax.random.split(keys[1 + d], 4)
        w1t, b1 = lin(bk[0], num_patch, token_dim)
        w2t, b2 = lin(bk[1], token_dim, num_patch)
        w3t, b3 = lin(bk[2], dim, channel_dim)
        w4t, b4 = lin(bk[3], channel_dim, dim)
        blocks.append(dict(
            ln1w=jnp.ones((1, dim), jnp.float32), ln1b=jnp.zeros((1, dim), jnp.float32),
            w1t=w1t, b1=b1, w2t=w2t, b2=b2,
            ln2w=jnp.ones((1, dim), jnp.float32), ln2b=jnp.zeros((1, dim), jnp.float32),
            w3t=w3t, b3=b3, w4t=w4t, b4=b4,
        ))

    head_wt, head_b = lin(keys[-1], dim, num_classes)
    return dict(
        patch_w=patch_w, patch_b=patch_b, blocks=blocks,
        lnw=jnp.ones((1, dim), jnp.float32), lnb=jnp.zeros((1, dim), jnp.float32),
        head_wt=head_wt, head_b=head_b,
    )


def _ref_gelu(x):
    return 0.5 * x * (1.0 + jax.scipy.special.erf(x * _INV_SQRT2))


def _ref_ln(x, w, b, eps=1e-5):
    mu = jnp.mean(x, axis=-1, keepdims=True)
    var = jnp.mean((x - mu) ** 2, axis=-1, keepdims=True)
    return (x - mu) / jnp.sqrt(var + eps) * w + b


def reference_forward(x, params, patch_size):
    h = extract_patches(x, patch_size) @ params["patch_w"] + params["patch_b"]
    for blk in params["blocks"]:
        y = _ref_ln(h, blk["ln1w"], blk["ln1b"])
        y = jnp.swapaxes(y, 1, 2)
        y = _ref_gelu(y @ blk["w1t"] + blk["b1"]) @ blk["w2t"] + blk["b2"]
        h = h + jnp.swapaxes(y, 1, 2)
        y = _ref_ln(h, blk["ln2w"], blk["ln2b"])
        h = h + _ref_gelu(y @ blk["w3t"] + blk["b3"]) @ blk["w4t"] + blk["b4"]
    y = _ref_ln(h, params["lnw"], params["lnb"]).mean(axis=1)
    return y @ params["head_wt"] + params["head_b"]


# ------------------------------------ main ------------------------------------

if __name__ == "__main__":
    # Small config consistent with MLPMixer(__init__):
    #   in_channels=3, dim=64, patch_size=4, image_size=16, depth=2,
    #   mlp_ratio=(0.5, 4.0) -> token_dim=32, channel_dim=256, num_classes=10
    # nn.Dropout has p=0.0 -> identity, nothing to implement.
    B, C, H = 2, 3, 16
    dim, patch_size, depth, num_classes = 64, 4, 2, 10
    num_patch = (H // patch_size) ** 2
    token_dim, channel_dim = int(0.5 * dim), int(4.0 * dim)

    key = jax.random.PRNGKey(0)
    kx, kp = jax.random.split(key)
    x = jax.random.normal(kx, (B, C, H, H), jnp.float32)
    params = init_params(kp, C, dim, patch_size, num_patch, depth,
                         token_dim, channel_dim, num_classes)

    ref = jax.block_until_ready(reference_forward(x, params, patch_size))

    forward = jax.jit(mlp_mixer_forward, static_argnums=(2, 3))

    # Batch tile: all samples per grid step at this toy size.  For large B,
    # pick a divisor of B so bt * num_patch >= 128-256 (fills MXU rows).
    batch_tile = B

    # 1) Exact f32 matmul path: must match the PyTorch-equivalent reference.
    packed_f32 = pack_params(params, batch_tile, compute_dtype=jnp.float32)
    out_f32 = jax.block_until_ready(forward(x, packed_f32, patch_size, num_classes))
    np.testing.assert_allclose(np.asarray(out_f32), np.asarray(ref),
                               rtol=1e-3, atol=1e-3)

    # 2) bf16 matmul operands (f32 accumulation) — MXU-rate path; numerics
    #    differ slightly from the f32 torch module, so looser tolerance.
    packed_bf16 = pack_params(params, batch_tile, compute_dtype=jnp.bfloat16)
    out_bf16 = jax.block_until_ready(forward(x, packed_bf16, patch_size, num_classes))
    np.testing.assert_allclose(np.asarray(out_bf16), np.asarray(ref),
                               rtol=5e-2, atol=3e-2)

    print("KERNEL_OK")
</pallas_src>

<mosaic_0001>
module attributes {stable_mosaic.version = 11 : i64} {
  func.func @mixer_kernel(%arg0: i32, %arg1: i32, %arg2: memref<32x48xf32, #tpu.memory_space<vmem>>, %arg3: memref<48x64xf32, #tpu.memory_space<vmem>>, %arg4: memref<1x64xf32, #tpu.memory_space<vmem>>, %arg5: memref<1x1x64xf32, #tpu.memory_space<vmem>>, %arg6: memref<1x1x64xf32, #tpu.memory_space<vmem>>, %arg7: memref<1x32x16xf32, #tpu.memory_space<vmem>>, %arg8: memref<1x32x1xf32, #tpu.memory_space<vmem>>, %arg9: memref<1x16x32xf32, #tpu.memory_space<vmem>>, %arg10: memref<1x16x1xf32, #tpu.memory_space<vmem>>, %arg11: memref<1x1x64xf32, #tpu.memory_space<vmem>>, %arg12: memref<1x1x64xf32, #tpu.memory_space<vmem>>, %arg13: memref<1x64x256xf32, #tpu.memory_space<vmem>>, %arg14: memref<1x1x256xf32, #tpu.memory_space<vmem>>, %arg15: memref<1x256x64xf32, #tpu.memory_space<vmem>>, %arg16: memref<1x1x64xf32, #tpu.memory_space<vmem>>, %arg17: memref<1x64xf32, #tpu.memory_space<vmem>>, %arg18: memref<1x64xf32, #tpu.memory_space<vmem>>, %arg19: memref<2x32xf32, #tpu.memory_space<vmem>>, %arg20: memref<64x128xf32, #tpu.memory_space<vmem>>, %arg21: memref<1x128xf32, #tpu.memory_space<vmem>>, %arg22: memref<2x128xf32, #tpu.memory_space<vmem>>, %arg23: memref<32x64xf32, #tpu.memory_space<vmem>>) attributes {dimension_semantics = [#tpu.dimension_semantics<parallel>, #tpu.dimension_semantics<arbitrary>], iteration_bounds = array<i64: 1, 2>, scalar_prefetch = 0 : i64, scratch_operands = 1 : i64, tpu.core_type = #tpu.core_type<tc>, window_params = [{transform_indices = @transform_0, window_bounds = array<i64: 32, 48>}, {pipeline_mode = #tpu.pipeline_mode<synchronous>, transform_indices = @transform_1, window_bounds = array<i64: 48, 64>}, {pipeline_mode = #tpu.pipeline_mode<synchronous>, transform_indices = @transform_2, window_bounds = array<i64: 1, 64>}, {transform_indices = @transform_3, window_bounds = array<i64: 1, 1, 64>}, {transform_indices = @transform_4, window_bounds = array<i64: 1, 1, 64>}, {transform_indices = @transform_5, window_bounds = array<i64: 1, 32, 16>}, {transform_indices = @transform_6, window_bounds = array<i64: 1, 32, 1>}, {transform_indices = @transform_7, window_bounds = array<i64: 1, 16, 32>}, {transform_indices = @transform_8, window_bounds = array<i64: 1, 16, 1>}, {transform_indices = @transform_9, window_bounds = array<i64: 1, 1, 64>}, {transform_indices = @transform_10, window_bounds = array<i64: 1, 1, 64>}, {transform_indices = @transform_11, window_bounds = array<i64: 1, 64, 256>}, {transform_indices = @transform_12, window_bounds = array<i64: 1, 1, 256>}, {transform_indices = @transform_13, window_bounds = array<i64: 1, 256, 64>}, {transform_indices = @transform_14, window_bounds = array<i64: 1, 1, 64>}, {pipeline_mode = #tpu.pipeline_mode<synchronous>, transform_indices = @transform_15, window_bounds = array<i64: 1, 64>}, {pipeline_mode = #tpu.pipeline_mode<synchronous>, transform_indices = @transform_16, window_bounds = array<i64: 1, 64>}, {pipeline_mode = #tpu.pipeline_mode<synchronous>, transform_indices = @transform_17, window_bounds = array<i64: 2, 32>}, {pipeline_mode = #tpu.pipeline_mode<synchronous>, transform_indices = @transform_18, window_bounds = array<i64: 64, 128>}, {pipeline_mode = #tpu.pipeline_mode<synchronous>, transform_indices = @transform_19, window_bounds = array<i64: 1, 128>}, {transform_indices = @transform_20, window_bounds = array<i64: 2, 128>}]} {
    %c0_i32 = arith.constant 0 : i32
    %0 = arith.cmpi eq, %arg1, %c0_i32 : i32
    %1 = arith.extui %0 : i1 to i32
    %c0_i32_0 = arith.constant 0 : i32
    %2 = arith.cmpi ne, %1, %c0_i32_0 : i32
    scf.if %2 {
      %c0_70 = arith.constant 0 : index
      %c0_71 = arith.constant 0 : index
      %128 = vector.load %arg2[%c0_70, %c0_71] : memref<32x48xf32, #tpu.memory_space<vmem>>, vector<32x48xf32>
      %c0_72 = arith.constant 0 : index
      %c0_73 = arith.constant 0 : index
      %129 = vector.load %arg3[%c0_72, %c0_73] : memref<48x64xf32, #tpu.memory_space<vmem>>, vector<48x64xf32>
      %cst_74 = arith.constant dense<0.000000e+00> : vector<32x64xf32>
      %130 = tpu.matmul %128, %129, %cst_74 {dimension_numbers = #tpu.dot_dimension_numbers<[1], [0], [0], [1], [0, 0, 1, 1], [], []>} : vector<32x48xf32>, vector<48x64xf32>, vector<32x64xf32> -> vector<32x64xf32>
      %c0_75 = arith.constant 0 : index
      %c0_76 = arith.constant 0 : index
      %131 = vector.load %arg4[%c0_75, %c0_76] : memref<1x64xf32, #tpu.memory_space<vmem>>, vector<1x64xf32>
      %132 = vector.broadcast %131 : vector<1x64xf32> to vector<32x64xf32>
      %133 = arith.addf %130, %132 : vector<32x64xf32>
      %c0_77 = arith.constant 0 : index
      %c0_78 = arith.constant 0 : index
      %134 = vector.load %arg23[%c0_77, %c0_78] : memref<32x64xf32, #tpu.memory_space<vmem>>, vector<32x64xf32>
      tpu.vector_store %arg23[%c0_77, %c0_78], %133 {strides = array<i32>} : memref<32x64xf32, #tpu.memory_space<vmem>>, vector<32x64xf32>,
    } else {
    }
    %c0 = arith.constant 0 : index
    %c0_1 = arith.constant 0 : index
    %3 = vector.load %arg23[%c0, %c0_1] : memref<32x64xf32, #tpu.memory_space<vmem>>, vector<32x64xf32>
    %c0_2 = arith.constant 0 : index
    %c0_3 = arith.constant 0 : index
    %c0_4 = arith.constant 0 : index
    %4 = vector.load %arg5[%c0_2, %c0_3, %c0_4] : memref<1x1x64xf32, #tpu.memory_space<vmem>>, vector<1x1x64xf32>
    %5 = vector.shape_cast %4 : vector<1x1x64xf32> to vector<1x64xf32>
    %c0_5 = arith.constant 0 : index
    %c0_6 = arith.constant 0 : index
    %c0_7 = arith.constant 0 : index
    %6 = vector.load %arg6[%c0_5, %c0_6, %c0_7] : memref<1x1x64xf32, #tpu.memory_space<vmem>>, vector<1x1x64xf32>
    %7 = vector.shape_cast %6 : vector<1x1x64xf32> to vector<1x64xf32>
    %cst = arith.constant dense<0.000000e+00> : vector<32xf32>
    %8 = vector.multi_reduction <add>, %3, %cst [1] : vector<32x64xf32> to vector<32xf32>
    %9 = vector.shape_cast %8 : vector<32xf32> to vector<32x1xf32>
    %cst_8 = arith.constant 6.400000e+01 : f32
    %10 = vector.broadcast %cst_8 : f32 to vector<32x1xf32>
    %11 = arith.divf %9, %10 : vector<32x1xf32>
    %12 = arith.mulf %3, %3 : vector<32x64xf32>
    %cst_9 = arith.constant dense<0.000000e+00> : vector<32xf32>
    %13 = vector.multi_reduction <add>, %12, %cst_9 [1] : vector<32x64xf32> to vector<32xf32>
    %14 = vector.shape_cast %13 : vector<32xf32> to vector<32x1xf32>
    %cst_10 = arith.constant 6.400000e+01 : f32
    %15 = vector.broadcast %cst_10 : f32 to vector<32x1xf32>
    %16 = arith.divf %14, %15 : vector<32x1xf32>
    %17 = arith.mulf %11, %11 : vector<32x1xf32>
    %18 = arith.subf %16, %17 : vector<32x1xf32>
    %19 = vector.broadcast %11 : vector<32x1xf32> to vector<32x64xf32>
    %20 = arith.subf %3, %19 : vector<32x64xf32>
    %cst_11 = arith.constant 9.99999974E-6 : f32
    %21 = vector.broadcast %cst_11 : f32 to vector<32x1xf32>
    %22 = arith.addf %18, %21 : vector<32x1xf32>
    %23 = math.rsqrt %22 : vector<32x1xf32>
    %24 = vector.broadcast %23 : vector<32x1xf32> to vector<32x64xf32>
    %25 = arith.mulf %20, %24 : vector<32x64xf32>
    %26 = vector.broadcast %5 : vector<1x64xf32> to vector<32x64xf32>
    %27 = arith.mulf %25, %26 : vector<32x64xf32>
    %28 = vector.broadcast %7 : vector<1x64xf32> to vector<32x64xf32>
    %29 = arith.addf %27, %28 : vector<32x64xf32>
    %c0_12 = arith.constant 0 : index
    %c0_13 = arith.constant 0 : index
    %c0_14 = arith.constant 0 : index
    %30 = vector.load %arg7[%c0_12, %c0_13, %c0_14] : memref<1x32x16xf32, #tpu.memory_space<vmem>>, vector<1x32x16xf32>
    %31 = vector.shape_cast %30 : vector<1x32x16xf32> to vector<32x16xf32>
    %c0_15 = arith.constant 0 : index
    %c0_16 = arith.constant 0 : index
    %c0_17 = arith.constant 0 : index
    %32 = vector.load %arg8[%c0_15, %c0_16, %c0_17] : memref<1x32x1xf32, #tpu.memory_space<vmem>>, vector<1x32x1xf32>
    %33 = vector.shape_cast %32 : vector<1x32x1xf32> to vector<32x1xf32>
    %c0_18 = arith.constant 0 : index
    %c0_19 = arith.constant 0 : index
    %c0_20 = arith.constant 0 : index
    %34 = vector.load %arg9[%c0_18, %c0_19, %c0_20] : memref<1x16x32xf32, #tpu.memory_space<vmem>>, vector<1x16x32xf32>
    %35 = vector.shape_cast %34 : vector<1x16x32xf32> to vector<16x32xf32>
    %c0_21 = arith.constant 0 : index
    %c0_22 = arith.constant 0 : index
    %c0_23 = arith.constant 0 : index
    %36 = vector.load %arg10[%c0_21, %c0_22, %c0_23] : memref<1x16x1xf32, #tpu.memory_space<vmem>>, vector<1x16x1xf32>
    %37 = vector.shape_cast %36 : vector<1x16x1xf32> to vector<16x1xf32>
    %38 = vector.extract_strided_slice %29 {offsets = [0, 0], sizes = [16, 64], strides = [1, 1]} : vector<32x64xf32> to vector<16x64xf32>
    %cst_24 = arith.constant dense<0.000000e+00> : vector<32x64xf32>
    %39 = tpu.matmul %31, %38, %cst_24 {dimension_numbers = #tpu.dot_dimension_numbers<[1], [0], [0], [1], [0, 0, 1, 1], [], []>} : vector<32x16xf32>, vector<16x64xf32>, vector<32x64xf32> -> vector<32x64xf32>
    %40 = vector.broadcast %33 : vector<32x1xf32> to vector<32x64xf32>
    %41 = arith.addf %39, %40 : vector<32x64xf32>
    %cst_25 = arith.constant 5.000000e-01 : f32
    %42 = vector.broadcast %cst_25 : f32 to vector<32x64xf32>
    %43 = arith.mulf %42, %41 : vector<32x64xf32>
    %cst_26 = arith.constant 0.707106769 : f32
    %44 = vector.broadcast %cst_26 : f32 to vector<32x64xf32>
    %45 = arith.mulf %41, %44 : vector<32x64xf32>
    %46 = math.erf %45 : vector<32x64xf32>
    %cst_27 = arith.constant 1.000000e+00 : f32
    %47 = vector.broadcast %cst_27 : f32 to vector<32x64xf32>
    %48 = arith.addf %47, %46 : vector<32x64xf32>
    %49 = arith.mulf %43, %48 : vector<32x64xf32>
    %50 = vector.extract_strided_slice %3 {offsets = [0, 0], sizes = [16, 64], strides = [1, 1]} : vector<32x64xf32> to vector<16x64xf32>
    %cst_28 = arith.constant dense<0.000000e+00> : vector<16x64xf32>
    %51 = tpu.matmul %35, %49, %cst_28 {dimension_numbers = #tpu.dot_dimension_numbers<[1], [0], [0], [1], [0, 0, 1, 1], [], []>} : vector<16x32xf32>, vector<32x64xf32>, vector<16x64xf32> -> vector<16x64xf32>
    %52 = arith.addf %50, %51 : vector<16x64xf32>
    %53 = vector.broadcast %37 : vector<16x1xf32> to vector<16x64xf32>
    %54 = arith.addf %52, %53 : vector<16x64xf32>
    %c0_29 = arith.constant 0 : index
    %c0_30 = arith.constant 0 : index
    %55 = vector.load %arg23[%c0_29, %c0_30] : memref<32x64xf32, #tpu.memory_space<vmem>>, vector<16x64xf32>
    tpu.vector_store %arg23[%c0_29, %c0_30], %54 {strides = array<i32>} : memref<32x64xf32, #tpu.memory_space<vmem>>, vector<16x64xf32>,
    %56 = vector.extract_strided_slice %29 {offsets = [16, 0], sizes = [16, 64], strides = [1, 1]} : vector<32x64xf32> to vector<16x64xf32>
    %cst_31 = arith.constant dense<0.000000e+00> : vector<32x64xf32>
    %57 = tpu.matmul %31, %56, %cst_31 {dimension_numbers = #tpu.dot_dimension_numbers<[1], [0], [0], [1], [0, 0, 1, 1], [], []>} : vector<32x16xf32>, vector<16x64xf32>, vector<32x64xf32> -> vector<32x64xf32>
    %58 = vector.broadcast %33 : vector<32x1xf32> to vector<32x64xf32>
    %59 = arith.addf %57, %58 : vector<32x64xf32>
    %cst_32 = arith.constant 5.000000e-01 : f32
    %60 = vector.broadcast %cst_32 : f32 to vector<32x64xf32>
    %61 = arith.mulf %60, %59 : vector<32x64xf32>
    %cst_33 = arith.constant 0.707106769 : f32
    %62 = vector.broadcast %cst_33 : f32 to vector<32x64xf32>
    %63 = arith.mulf %59, %62 : vector<32x64xf32>
    %64 = math.erf %63 : vector<32x64xf32>
    %cst_34 = arith.constant 1.000000e+00 : f32
    %65 = vector.broadcast %cst_34 : f32 to vector<32x64xf32>
    %66 = arith.addf %65, %64 : vector<32x64xf32>
    %67 = arith.mulf %61, %66 : vector<32x64xf32>
    %68 = vector.extract_strided_slice %3 {offsets = [16, 0], sizes = [16, 64], strides = [1, 1]} : vector<32x64xf32> to vector<16x64xf32>
    %cst_35 = arith.constant dense<0.000000e+00> : vector<16x64xf32>
    %69 = tpu.matmul %35, %67, %cst_35 {dimension_numbers = #tpu.dot_dimension_numbers<[1], [0], [0], [1], [0, 0, 1, 1], [], []>} : vector<16x32xf32>, vector<32x64xf32>, vector<16x64xf32> -> vector<16x64xf32>
    %70 = arith.addf %68, %69 : vector<16x64xf32>
    %71 = vector.broadcast %37 : vector<16x1xf32> to vector<16x64xf32>
    %72 = arith.addf %70, %71 : vector<16x64xf32>
    %c16 = arith.constant 16 : index
    %c0_36 = arith.constant 0 : index
    %73 = vector.load %arg23[%c16, %c0_36] : memref<32x64xf32, #tpu.memory_space<vmem>>, vector<16x64xf32>
    tpu.vector_store %arg23[%c16, %c0_36], %72 {strides = array<i32>} : memref<32x64xf32, #tpu.memory_space<vmem>>, vector<16x64xf32>,
    %c0_37 = arith.constant 0 : index
    %c0_38 = arith.constant 0 : index
    %74 = vector.load %arg23[%c0_37, %c0_38] : memref<32x64xf32, #tpu.memory_space<vmem>>, vector<32x64xf32>
    %c0_39 = arith.constant 0 : index
    %c0_40 = arith.constant 0 : index
    %c0_41 = arith.constant 0 : index
    %75 = vector.load %arg11[%c0_39, %c0_40, %c0_41] : memref<1x1x64xf32, #tpu.memory_space<vmem>>, vector<1x1x64xf32>
    %76 = vector.shape_cast %75 : vector<1x1x64xf32> to vector<1x64xf32>
    %c0_42 = arith.constant 0 : index
    %c0_43 = arith.constant 0 : index
    %c0_44 = arith.constant 0 : index
    %77 = vector.load %arg12[%c0_42, %c0_43, %c0_44] : memref<1x1x64xf32, #tpu.memory_space<vmem>>, vector<1x1x64xf32>
    %78 = vector.shape_cast %77 : vector<1x1x64xf32> to vector<1x64xf32>
    %cst_45 = arith.constant dense<0.000000e+00> : vector<32xf32>
    %79 = vector.multi_reduction <add>, %74, %cst_45 [1] : vector<32x64xf32> to vector<32xf32>
    %80 = vector.shape_cast %79 : vector<32xf32> to vector<32x1xf32>
    %cst_46 = arith.constant 6.400000e+01 : f32
    %81 = vector.broadcast %cst_46 : f32 to vector<32x1xf32>
    %82 = arith.divf %80, %81 : vector<32x1xf32>
    %83 = arith.mulf %74, %74 : vector<32x64xf32>
    %cst_47 = arith.constant dense<0.000000e+00> : vector<32xf32>
    %84 = vector.multi_reduction <add>, %83, %cst_47 [1] : vector<32x64xf32> to vector<32xf32>
    %85 = vector.shape_cast %84 : vector<32xf32> to vector<32x1xf32>
    %cst_48 = arith.constant 6.400000e+01 : f32
    %86 = vector.broadcast %cst_48 : f32 to vector<32x1xf32>
    %87 = arith.divf %85, %86 : vector<32x1xf32>
    %88 = arith.mulf %82, %82 : vector<32x1xf32>
    %89 = arith.subf %87, %88 : vector<32x1xf32>
    %90 = vector.broadcast %82 : vector<32x1xf32> to vector<32x64xf32>
    %91 = arith.subf %74, %90 : vector<32x64xf32>
    %cst_49 = arith.constant 9.99999974E-6 : f32
    %92 = vector.broadcast %cst_49 : f32 to vector<32x1xf32>
    %93 = arith.addf %89, %92 : vector<32x1xf32>
    %94 = math.rsqrt %93 : vector<32x1xf32>
    %95 = vector.broadcast %94 : vector<32x1xf32> to vector<32x64xf32>
    %96 = arith.mulf %91, %95 : vector<32x64xf32>
    %97 = vector.broadcast %76 : vector<1x64xf32> to vector<32x64xf32>
    %98 = arith.mulf %96, %97 : vector<32x64xf32>
    %99 = vector.broadcast %78 : vector<1x64xf32> to vector<32x64xf32>
    %100 = arith.addf %98, %99 : vector<32x64xf32>
    %c0_50 = arith.constant 0 : index
    %c0_51 = arith.constant 0 : index
    %c0_52 = arith.constant 0 : index
    %101 = vector.load %arg13[%c0_50, %c0_51, %c0_52] : memref<1x64x256xf32, #tpu.memory_space<vmem>>, vector<1x64x256xf32>
    %102 = vector.shape_cast %101 : vector<1x64x256xf32> to vector<64x256xf32>
    %cst_53 = arith.constant dense<0.000000e+00> : vector<32x256xf32>
    %103 = tpu.matmul %100, %102, %cst_53 {dimension_numbers = #tpu.dot_dimension_numbers<[1], [0], [0], [1], [0, 0, 1, 1], [], []>} : vector<32x64xf32>, vector<64x256xf32>, vector<32x256xf32> -> vector<32x256xf32>
    %c0_54 = arith.constant 0 : index
    %c0_55 = arith.constant 0 : index
    %c0_56 = arith.constant 0 : index
    %104 = vector.load %arg14[%c0_54, %c0_55, %c0_56] : memref<1x1x256xf32, #tpu.memory_space<vmem>>, vector<1x1x256xf32>
    %105 = vector.shape_cast %104 : vector<1x1x256xf32> to vector<1x256xf32>
    %106 = vector.broadcast %105 : vector<1x256xf32> to vector<32x256xf32>
    %107 = arith.addf %103, %106 : vector<32x256xf32>
    %cst_57 = arith.constant 5.000000e-01 : f32
    %108 = vector.broadcast %cst_57 : f32 to vector<32x256xf32>
    %109 = arith.mulf %108, %107 : vector<32x256xf32>
    %cst_58 = arith.constant 0.707106769 : f32
    %110 = vector.broadcast %cst_58 : f32 to vector<32x256xf32>
    %111 = arith.mulf %107, %110 : vector<32x256xf32>
    %112 = math.erf %111 : vector<32x256xf32>
    %cst_59 = arith.constant 1.000000e+00 : f32
    %113 = vector.broadcast %cst_59 : f32 to vector<32x256xf32>
    %114 = arith.addf %113, %112 : vector<32x256xf32>
    %115 = arith.mulf %109, %114 : vector<32x256xf32>
    %c0_60 = arith.constant 0 : index
    %c0_61 = arith.constant 0 : index
    %c0_62 = arith.constant 0 : index
    %116 = vector.load %arg15[%c0_60, %c0_61, %c0_62] : memref<1x256x64xf32, #tpu.memory_space<vmem>>, vector<1x256x64xf32>
    %117 = vector.shape_cast %116 : vector<1x256x64xf32> to vector<256x64xf32>
    %cst_63 = arith.constant dense<0.000000e+00> : vector<32x64xf32>
    %118 = tpu.matmul %115, %117, %cst_63 {dimension_numbers = #tpu.dot_dimension_numbers<[1], [0], [0], [1], [0, 0, 1, 1], [], []>} : vector<32x256xf32>, vector<256x64xf32>, vector<32x64xf32> -> vector<32x64xf32>
    %119 = arith.addf %74, %118 : vector<32x64xf32>
    %c0_64 = arith.constant 0 : index
    %c0_65 = arith.constant 0 : index
    %c0_66 = arith.constant 0 : index
    %120 = vector.load %arg16[%c0_64, %c0_65, %c0_66] : memref<1x1x64xf32, #tpu.memory_space<vmem>>, vector<1x1x64xf32>
    %121 = vector.shape_cast %120 : vector<1x1x64xf32> to vector<1x64xf32>
    %122 = vector.broadcast %121 : vector<1x64xf32> to vector<32x64xf32>
    %123 = arith.addf %119, %122 : vector<32x64xf32>
    %c0_67 = arith.constant 0 : index
    %c0_68 = arith.constant 0 : index
    %124 = vector.load %arg23[%c0_67, %c0_68] : memref<32x64xf32, #tpu.memory_space<vmem>>, vector<32x64xf32>
    tpu.vector_store %arg23[%c0_67, %c0_68], %123 {strides = array<i32>} : memref<32x64xf32, #tpu.memory_space<vmem>>, vector<32x64xf32>,
    %c1_i32 = arith.constant 1 : i32
    %125 = arith.cmpi eq, %arg1, %c1_i32 : i32
    %126 = arith.extui %125 : i1 to i32
    %c0_i32_69 = arith.constant 0 : i32
    %127 = arith.cmpi ne, %126, %c0_i32_69 : i32
    scf.if %127 {
      %c0_70 = arith.constant 0 : index
      %c0_71 = arith.constant 0 : index
      %128 = vector.load %arg17[%c0_70, %c0_71] : memref<1x64xf32, #tpu.memory_space<vmem>>, vector<1x64xf32>
      %c0_72 = arith.constant 0 : index
      %c0_73 = arith.constant 0 : index
      %129 = vector.load %arg18[%c0_72, %c0_73] : memref<1x64xf32, #tpu.memory_space<vmem>>, vector<1x64xf32>
      %cst_74 = arith.constant dense<0.000000e+00> : vector<32xf32>
      %130 = vector.multi_reduction <add>, %123, %cst_74 [1] : vector<32x64xf32> to vector<32xf32>
      %131 = vector.shape_cast %130 : vector<32xf32> to vector<32x1xf32>
      %cst_75 = arith.constant 6.400000e+01 : f32
      %132 = vector.broadcast %cst_75 : f32 to vector<32x1xf32>
      %133 = arith.divf %131, %132 : vector<32x1xf32>
      %134 = arith.mulf %123, %123 : vector<32x64xf32>
      %cst_76 = arith.constant dense<0.000000e+00> : vector<32xf32>
      %135 = vector.multi_reduction <add>, %134, %cst_76 [1] : vector<32x64xf32> to vector<32xf32>
      %136 = vector.shape_cast %135 : vector<32xf32> to vector<32x1xf32>
      %cst_77 = arith.constant 6.400000e+01 : f32
      %137 = vector.broadcast %cst_77 : f32 to vector<32x1xf32>
      %138 = arith.divf %136, %137 : vector<32x1xf32>
      %139 = arith.mulf %133, %133 : vector<32x1xf32>
      %140 = arith.subf %138, %139 : vector<32x1xf32>
      %141 = vector.broadcast %133 : vector<32x1xf32> to vector<32x64xf32>
      %142 = arith.subf %123, %141 : vector<32x64xf32>
      %cst_78 = arith.constant 9.99999974E-6 : f32
      %143 = vector.broadcast %cst_78 : f32 to vector<32x1xf32>
      %144 = arith.addf %140, %143 : vector<32x1xf32>
      %145 = math.rsqrt %144 : vector<32x1xf32>
      %146 = vector.broadcast %145 : vector<32x1xf32> to vector<32x64xf32>
      %147 = arith.mulf %142, %146 : vector<32x64xf32>
      %148 = vector.broadcast %128 : vector<1x64xf32> to vector<32x64xf32>
      %149 = arith.mulf %147, %148 : vector<32x64xf32>
      %150 = vector.broadcast %129 : vector<1x64xf32> to vector<32x64xf32>
      %151 = arith.addf %149, %150 : vector<32x64xf32>
      %c0_79 = arith.constant 0 : index
      %c0_80 = arith.constant 0 : index
      %152 = vector.load %arg19[%c0_79, %c0_80] : memref<2x32xf32, #tpu.memory_space<vmem>>, vector<2x32xf32>
      %cst_81 = arith.constant dense<0.000000e+00> : vector<2x64xf32>
      %153 = tpu.matmul %152, %151, %cst_81 {dimension_numbers = #tpu.dot_dimension_numbers<[1], [0], [0], [1], [0, 0, 1, 1], [], []>} : vector<2x32xf32>, vector<32x64xf32>, vector<2x64xf32> -> vector<2x64xf32>
      %c0_82 = arith.constant 0 : index
      %c0_83 = arith.constant 0 : index
      %154 = vector.load %arg20[%c0_82, %c0_83] : memref<64x128xf32, #tpu.memory_space<vmem>>, vector<64x128xf32>
      %cst_84 = arith.constant dense<0.000000e+00> : vector<2x128xf32>
      %155 = tpu.matmul %153, %154, %cst_84 {dimension_numbers = #tpu.dot_dimension_numbers<[1], [0], [0], [1], [0, 0, 1, 1], [], []>} : vector<2x64xf32>, vector<64x128xf32>, vector<2x128xf32> -> vector<2x128xf32>
      %c0_85 = arith.constant 0 : index
      %c0_86 = arith.constant 0 : index
      %156 = vector.load %arg21[%c0_85, %c0_86] : memref<1x128xf32, #tpu.memory_space<vmem>>, vector<1x128xf32>
      %157 = vector.broadcast %156 : vector<1x128xf32> to vector<2x128xf32>
      %158 = arith.addf %155, %157 : vector<2x128xf32>
      %c0_87 = arith.constant 0 : index
      %c0_88 = arith.constant 0 : index
      %159 = vector.load %arg22[%c0_87, %c0_88] : memref<2x128xf32, #tpu.memory_space<vmem>>, vector<2x128xf32>
      tpu.vector_store %arg22[%c0_87, %c0_88], %158 {strides = array<i32>} : memref<2x128xf32, #tpu.memory_space<vmem>>, vector<2x128xf32>,
    } else {
    }
    return
  }
  func.func @transform_0(%arg0: i32, %arg1: i32) -> (i32, i32) {
    %c0_i32 = arith.constant 0 : i32
    %c0_i32_0 = arith.constant 0 : i32
    return %arg0, %c0_i32 : i32, i32
  }
  func.func @transform_1(%arg0: i32, %arg1: i32) -> (i32, i32) {
    %c0_i32 = arith.constant 0 : i32
    %c0_i32_0 = arith.constant 0 : i32
    %c0_i32_1 = arith.constant 0 : i32
    return %c0_i32, %c0_i32_0 : i32, i32
  }
  func.func @transform_2(%arg0: i32, %arg1: i32) -> (i32, i32) {
    %c0_i32 = arith.constant 0 : i32
    %c0_i32_0 = arith.constant 0 : i32
    %c0_i32_1 = arith.constant 0 : i32
    return %c0_i32, %c0_i32_0 : i32, i32
  }
  func.func @transform_3(%arg0: i32, %arg1: i32) -> (i32, i32, i32) {
    %c0_i32 = arith.constant 0 : i32
    %c0_i32_0 = arith.constant 0 : i32
    %c0_i32_1 = arith.constant 0 : i32
    return %arg1, %c0_i32, %c0_i32_0 : i32, i32, i32
  }
  func.func @transform_4(%arg0: i32, %arg1: i32) -> (i32, i32, i32) {
    %c0_i32 = arith.constant 0 : i32
    %c0_i32_0 = arith.constant 0 : i32
    %c0_i32_1 = arith.constant 0 : i32
    return %arg1, %c0_i32, %c0_i32_0 : i32, i32, i32
  }
  func.func @transform_5(%arg0: i32, %arg1: i32) -> (i32, i32, i32) {
    %c0_i32 = arith.constant 0 : i32
    %c0_i32_0 = arith.constant 0 : i32
    %c0_i32_1 = arith.constant 0 : i32
    return %arg1, %c0_i32, %c0_i32_0 : i32, i32, i32
  }
  func.func @transform_6(%arg0: i32, %arg1: i32) -> (i32, i32, i32) {
    %c0_i32 = arith.constant 0 : i32
    %c0_i32_0 = arith.constant 0 : i32
    %c0_i32_1 = arith.constant 0 : i32
    return %arg1, %c0_i32, %c0_i32_0 : i32, i32, i32
  }
  func.func @transform_7(%arg0: i32, %arg1: i32) -> (i32, i32, i32) {
    %c0_i32 = arith.constant 0 : i32
    %c0_i32_0 = arith.constant 0 : i32
    %c0_i32_1 = arith.constant 0 : i32
    return %arg1, %c0_i32, %c0_i32_0 : i32, i32, i32
  }
  func.func @transform_8(%arg0: i32, %arg1: i32) -> (i32, i32, i32) {
    %c0_i32 = arith.constant 0 : i32
    %c0_i32_0 = arith.constant 0 : i32
    %c0_i32_1 = arith.constant 0 : i32
    return %arg1, %c0_i32, %c0_i32_0 : i32, i32, i32
  }
  func.func @transform_9(%arg0: i32, %arg1: i32) -> (i32, i32, i32) {
    %c0_i32 = arith.constant 0 : i32
    %c0_i32_0 = arith.constant 0 : i32
    %c0_i32_1 = arith.constant 0 : i32
    return %arg1, %c0_i32, %c0_i32_0 : i32, i32, i32
  }
  func.func @transform_10(%arg0: i32, %arg1: i32) -> (i32, i32, i32) {
    %c0_i32 = arith.constant 0 : i32
    %c0_i32_0 = arith.constant 0 : i32
    %c0_i32_1 = arith.constant 0 : i32
    return %arg1, %c0_i32, %c0_i32_0 : i32, i32, i32
  }
  func.func @transform_11(%arg0: i32, %arg1: i32) -> (i32, i32, i32) {
    %c0_i32 = arith.constant 0 : i32
    %c0_i32_0 = arith.constant 0 : i32
    %c0_i32_1 = arith.constant 0 : i32
    return %arg1, %c0_i32, %c0_i32_0 : i32, i32, i32
  }
  func.func @transform_12(%arg0: i32, %arg1: i32) -> (i32, i32, i32) {
    %c0_i32 = arith.constant 0 : i32
    %c0_i32_0 = arith.constant 0 : i32
    %c0_i32_1 = arith.constant 0 : i32
    return %arg1, %c0_i32, %c0_i32_0 : i32, i32, i32
  }
  func.func @transform_13(%arg0: i32, %arg1: i32) -> (i32, i32, i32) {
    %c0_i32 = arith.constant 0 : i32
    %c0_i32_0 = arith.constant 0 : i32
    %c0_i32_1 = arith.constant 0 : i32
    return %arg1, %c0_i32, %c0_i32_0 : i32, i32, i32
  }
  func.func @transform_14(%arg0: i32, %arg1: i32) -> (i32, i32, i32) {
    %c0_i32 = arith.constant 0 : i32
    %c0_i32_0 = arith.constant 0 : i32
    %c0_i32_1 = arith.constant 0 : i32
    return %arg1, %c0_i32, %c0_i32_0 : i32, i32, i32
  }
  func.func @transform_15(%arg0: i32, %arg1: i32) -> (i32, i32) {
    %c0_i32 = arith.constant 0 : i32
    %c0_i32_0 = arith.constant 0 : i32
    %c0_i32_1 = arith.constant 0 : i32
    return %c0_i32, %c0_i32_0 : i32, i32
  }
  func.func @transform_16(%arg0: i32, %arg1: i32) -> (i32, i32) {
    %c0_i32 = arith.constant 0 : i32
    %c0_i32_0 = arith.constant 0 : i32
    %c0_i32_1 = arith.constant 0 : i32
    return %c0_i32, %c0_i32_0 : i32, i32
  }
  func.func @transform_17(%arg0: i32, %arg1: i32) -> (i32, i32) {
    %c0_i32 = arith.constant 0 : i32
    %c0_i32_0 = arith.constant 0 : i32
    %c0_i32_1 = arith.constant 0 : i32
    return %c0_i32, %c0_i32_0 : i32, i32
  }
  func.func @transform_18(%arg0: i32, %arg1: i32) -> (i32, i32) {
    %c0_i32 = arith.constant 0 : i32
    %c0_i32_0 = arith.constant 0 : i32
    %c0_i32_1 = arith.constant 0 : i32
    return %c0_i32, %c0_i32_0 : i32, i32
  }
  func.func @transform_19(%arg0: i32, %arg1: i32) -> (i32, i32) {
    %c0_i32 = arith.constant 0 : i32
    %c0_i32_0 = arith.constant 0 : i32
    %c0_i32_1 = arith.constant 0 : i32
    return %c0_i32, %c0_i32_0 : i32, i32
  }
  func.func @transform_20(%arg0: i32, %arg1: i32) -> (i32, i32) {
    %c0_i32 = arith.constant 0 : i32
    %c0_i32_0 = arith.constant 0 : i32
    return %arg0, %c0_i32 : i32, i32
  }
}

</mosaic_0001>

<bundles_post_ra>
// kernel: mlp_mixer_forward.1
= control target key start
LH: loop header
LB: loop body
LE: loop exit
PB: predicated region body
PF: predicated region fallthrough
CT: control target
= control target key end

     0   :  { %s3329_s0 = inlined_call_operand.vmem [shape: f32[32,48], index: 0, kind: input, shape index: {}]   ;;  %s3330_s1 = inlined_call_operand.vmem [shape: f32[48,64], index: 1, kind: input, shape index: {}]   ;;  %s3331_s2 = inlined_call_operand.vmem [shape: f32[1,64], index: 2, kind: input, shape index: {}]   ;;  %s3332_s3 = inlined_call_operand.vmem [shape: f32[2,1,64], index: 3, kind: input, shape index: {}]   ;;  %s3333_s4 = inlined_call_operand.vmem [shape: f32[2,1,64], index: 4, kind: input, shape index: {}]   ;;  %s3334_s5 = inlined_call_operand.vmem [shape: f32[2,32,16], index: 5, kind: input, shape index: {}]   ;;  %s3335_s6 = inlined_call_operand.vmem [shape: f32[2,32,1], index: 6, kind: input, shape index: {}]   ;;  %s3336_s7 = inlined_call_operand.vmem [shape: f32[2,16,32], index: 7, kind: input, shape index: {}]   ;;  %s3337_s8 = inlined_call_operand.vmem [shape: f32[2,16,1], index: 8, kind: input, shape index: {}]   ;;  %s3338_s9 = inlined_call_operand.vmem [shape: f32[2,1,64], index: 9, kind: input, shape index: {}]   ;;  %s3339_s10 = inlined_call_operand.vmem [shape: f32[2,1,64], index: 10, kind: input, shape index: {}]   ;;  %s3340_s11 = inlined_call_operand.vmem [shape: f32[2,64,256], index: 11, kind: input, shape index: {}]   ;;  %s3341_s12 = inlined_call_operand.vmem [shape: f32[2,1,256], index: 12, kind: input, shape index: {}]   ;;  %s3342_s13 = inlined_call_operand.vmem [shape: f32[2,256,64], index: 13, kind: input, shape index: {}]   ;;  %s3343_s14 = inlined_call_operand.vmem [shape: f32[2,1,64], index: 14, kind: input, shape index: {}]   ;;  %s3344_s15 = inlined_call_operand.vmem [shape: f32[1,64], index: 15, kind: input, shape index: {}]   ;;  %s3345_s16 = inlined_call_operand.vmem [shape: f32[1,64], index: 16, kind: input, shape index: {}]   ;;  %s3346_s17 = inlined_call_operand.vmem [shape: f32[2,32], index: 17, kind: input, shape index: {}]   ;;  %s3347_s18 = inlined_call_operand.vmem [shape: f32[64,128], index: 18, kind: input, shape index: {}]   ;;  %s3348_s19 = inlined_call_operand.vmem [shape: f32[1,128], index: 19, kind: input, shape index: {}]   ;;  %s3349_s20 = inlined_call_operand.hbm [shape: f32[2,128], index: 20, kind: output, shape index: {}]  }
   0x1   :  { %3354 = sst [smem:[#allocation9_spill]] %s3329_s0 }
   0x2   :  { %3355 = sst [smem:[#allocation10_spill]] %s3330_s1 }
   0x3   :  { %3356 = sst [smem:[#allocation11_spill]] %s3331_s2 }
   0x4   :  { %3357 = sst [smem:[#allocation12_spill]] %s3332_s3 }
   0x5   :  { %3358 = sst [smem:[#allocation13_spill]] %s3333_s4 }
   0x6   :  { %3359 = sst [smem:[#allocation14_spill]] %s3334_s5 }
   0x7   :  { %3360 = sst [smem:[#allocation15_spill]] %s3335_s6 }
   0x8   :  { %3361 = sst [smem:[#allocation16_spill]] %s3336_s7 }
   0x9   :  { %3362 = sst [smem:[#allocation17_spill]] %s3345_s16 }
   0xa   :  { %3363 = sst [smem:[#allocation18_spill]] %s3346_s17 }
   0xb   :  { %3364 = sst [smem:[#allocation19_spill]] %s3348_s19 }
   0xc   :  { %3365 = sst [smem:[#allocation20_spill]] %s3349_s20 }
   0xd   :  { %25 = vsyncpa [#allocation4], 0  ;;  %s2829_s1 = smov 0   ;;  %s2831_s22 = smov 0  }
   0xe   :  { %s2833_s23 = smov 0  }
   0xf LB: > { %3366 = sst [smem:[#allocation6_spill]] %s2713_s22  ;;  %s40_s2 = sadd.s32 1, %s2713_s22  ;;  %s2717_s23 = sphi %s2833_s23, %s31_s23   ;;  %s2713_s22 = sphi %s2831_s22, %s3391_s22   ;;  %s2709_s1 = sphi %s2829_s1, %s3390_s1  }
  0x10   : > { %3367 = sst [smem:[#allocation7_spill]] %s2717_s23  ;;  %p41_p0 = scmp.ge.s32.totalorder %s40_s2, 2 }
  0x11   : > { %p2323_p1 = scmp.ge.s32.totalorder %s2717_s23, 1  ;;  %p685_p2 = scmp.lt.s32.totalorder %s2717_s23, 3 }
  0x12   : > { %s3393_s2 = smov (%p41_p0, %s40_s2), 0 }
  0x13   : > { %3368 = sst [smem:[#allocation8_spill]] %s3393_s2  ;;  %p686_p3 = pnand %p2323_p1, %p685_p2 }
  0x14   : > { %p793_p4 = scmp.lt.s32.totalorder (!%p686_p3), %s2709_s1, 1  ;;  %s3371_s5 = sld [smem:[#allocation14_spill]] (!%p686_p3) }
  0x15   : > { %689 = sbr.rel (%p686_p3) target bundleno = 2280 (0x8e8), region = 100  ;;  %s3372_s6 = sld [smem:[#allocation15_spill]] (!%p686_p3) }
  0x16   : > { %s3373_s7 = sld [smem:[#allocation16_spill]] (!%p686_p3)  ;;  %p2337_p5 = scmp.ne.s32.totalorder (!%p686_p3), %s2709_s1, 0 }
  0x1a   : > { %s2852_s25 = scalar_select %p793_p4, %s2709_s1, 1 }
  0x1b   : > { %s3375_s19 = sld [smem:[#allocation9_spill]] (!%p2337_p5) }
  0x1c   : > { %s2374_s21 = sshll.u32 %s2852_s25, 5  ;;  %s2376_s24 = sshll.u32 %s2852_s25, 4 }
  0x1d   : > { %s2867_s3 = scalar_lea.vmem %s3371_s5, %s2374_s21  ;;  %s2872_s23 = scalar_lea.vmem %s3372_s6, %s2374_s21 }
  0x1e   : > { %s2877_s27 = scalar_lea.vmem %s3373_s7, %s2376_s24  ;;  %s2882_s29 = scalar_lea.vmem %s3337_s8, %s2376_s24 }
  0x1f   : > { %s824_s20 = scalar_lea.vmem %s3339_s10, %s2852_s25  ;;  %s2378_s21 = sshll.u32 %s2852_s25, 7 }
  0x20   : > { %s2334_s26 = sshll.u32 %s2852_s25, 1  ;;  %s2897_s17 = scalar_lea.vmem %s3340_s11, %s2378_s21 }
  0x21   : > { %s2902_s24 = scalar_lea.vmem %s3341_s12, %s2334_s26  ;;  %s2379_s28 = sshll.u32 %s2852_s25, 8 }
  0x22   : > { %s841_s30 = scalar_lea.vmem %s3343_s14, %s2852_s25  ;;  %s2912_s2 = scalar_lea.vmem %s3342_s13, %s2379_s28 }
  0x23   : > { %845 = sbr.rel (%p2337_p5) target bundleno = 252 (0xfc), region = 104  ;;  %s3374_s21 = sld [smem:[#allocation10_spill]] (!%p2337_p5) }
  0x24   : > { %s3376_s26 = sld [smem:[#allocation11_spill]] (!%p2337_p5) }
  0x28   : > { %v846_v6 = vld [vmem:[%s3375_s19] sm:$0xff]  ;;  %vm863_vm0 = vcmask 392192   ;;  %v848_v7 = vld [vmem:[%s3375_s19 + $0x10] sm:$0xff]  ;;  %v847_v8 = vld [vmem:[%s3375_s19 + $0x8] sm:$0xff]  ;;  %vm961_vm1 = vcmask 523264  }
  0x29   : > { %v855_v0 = vld [vmem:[%s3374_s21 + $0x28] sm:$0xff]  ;;  %v854_v1 = vld [vmem:[%s3374_s21 + $0x20] sm:$0xff]  ;;  %v853_v2 = vld [vmem:[%s3374_s21 + $0x18] sm:$0xff]  ;;  %2484 = vmatprep.mubr.msk.f32.mxu0 %vm863_vm0, %v846_v6  ;;  %2487 = vmatprep.mubr.msk.f32.mxu1 %vm863_vm0, %v848_v7 }
  0x2a   : > { %2472 = vmatprep.subr.mxu0 %v855_v0  ;;  %2562 = vmatprep.subr.mxu1 %v855_v0  ;;  %v852_v3 = vld [vmem:[%s3374_s21 + $0x10] sm:$0xff]  ;;  %v851_v4 = vld [vmem:[%s3374_s21 + $0x8] sm:$0xff]  ;;  %v850_v5 = vld [vmem:[%s3374_s21] sm:$0xff] }
  0x2b   : > { %2473 = vmatpush3.msra.mxu0 %v855_v0  ;;  %2568 = vmatpush3.msra.mxu1 %v855_v0  ;;  %v849_v9 = vld [vmem:[%s3375_s19 + $0x18] sm:$0xff]  ;;  %v2338_v10 = vld [vmem:[%s3376_s26] ss:$0 sm:$0xff] }
  0x2c   : > { %2474 = vmatprep.subr.mxu0 %v854_v1  ;;  %2563 = vmatprep.subr.mxu1 %v854_v1 }
  0x2d   : > { %2475 = vmatpush3.msra.mxu0 %v854_v1  ;;  %2569 = vmatpush3.msra.mxu1 %v854_v1 }
  0x2e   : > { %2476 = vmatprep.subr.mxu0 %v853_v2  ;;  %2564 = vmatprep.subr.mxu1 %v853_v2 }
  0x2f   : > { %2477 = vmatpush3.msra.mxu0 %v853_v2  ;;  %2570 = vmatpush3.msra.mxu1 %v853_v2 }
  0x30   : > { %2478 = vmatprep.subr.mxu0 %v852_v3  ;;  %2565 = vmatprep.subr.mxu1 %v852_v3 }
  0x31   : > { %2479 = vmatpush3.msra.mxu0 %v852_v3  ;;  %2571 = vmatpush3.msra.mxu1 %v852_v3 }
  0x32   : > { %2480 = vmatprep.subr.mxu0 %v851_v4  ;;  %2566 = vmatprep.subr.mxu1 %v851_v4 }
  0x33   : > { %2481 = vmatpush3.msra.mxu0 %v851_v4  ;;  %2572 = vmatpush3.msra.mxu1 %v851_v4 }
  0x34   : > { %2482 = vmatprep.subr.mxu0 %v850_v5  ;;  %2567 = vmatprep.subr.mxu1 %v850_v5 }
  0x35   : > { %2483 = vmatpush3.msra.mxu0 %v850_v5  ;;  %2573 = vmatpush3.msra.mxu1 %v850_v5 }
  0x36   : > { %2485 = vmatmul.mubr.msk.f32.vlgmr.msra.gmra.mxu0 %vm863_vm0, %v847_v8  ;;  %2488 = vmatmul.mubr.msk.f32.vlgmr.msra.gmra.mxu1 %vm863_vm0, %v849_v9 }
  0xf6   : > { %v2486_v11 = vpop.f32.mrf.mxu0  ;;  %v2489_v12 = vpop.f32.mrf.mxu1 }
  0xf7   : > { %v948_v13 = vadd.f32 %v2486_v11, %v2338_v10  ;;  %v958_v14 = vadd.f32 %v2489_v12, %v2338_v10 }
  0xf8   : > { %v942_v15 = vpop.f32.mrf.mxu0  ;;  %v952_v16 = vpop.f32.mrf.mxu1 }
  0xf9   : > { %963 = vst.msk [vmem:[#allocation2 + $0x8] sm:$0xff] %vm961_vm1, %v948_v13  ;;  %965 = vst.msk [vmem:[#allocation2 + $0x18] sm:$0xff] %vm961_vm1, %v958_v14  ;;  %v943_v17 = vadd.f32 %v2338_v10, %v942_v15  ;;  %v953_v18 = vadd.f32 %v2338_v10, %v952_v16 }
  0xfb   : > { %962 = vst.msk [vmem:[#allocation2] sm:$0xff] %vm961_vm1, %v943_v17  ;;  %964 = vst.msk [vmem:[#allocation2 + $0x10] sm:$0xff] %vm961_vm1, %v953_v18 }
  0xfc PF: > { %vm972_vm2 = vcmask 523264   ;;  %v2963_v27 = vld [vmem:[%s2867_s3] sm:$0xff]  ;;  %vm1086_vm3 = vcmask 130048   ;;  %v2719_v34 = vmov 0   ;;  %v1060_v37 = vld [vmem:[%s2872_s23 + $0x10] sm:$0xff]  ;;  %v1059_v38 = vld [vmem:[%s2872_s23 + $0x8] sm:$0xff] }
  0xfd   : > { %2494 = vmatprep.mubr.msk.f32.mxu0 %vm1086_vm3, %v2963_v27  ;;  %2610 = vset.pattern.permute.xlu1 %v2719_v34  ;;  %v1061_v39 = vld [vmem:[%s2872_s23 + $0x18] sm:$0xff]  ;;  %v1058_v40 = vld [vmem:[%s2872_s23] sm:$0xff]  ;;  %v1065_v42 = vld [vmem:[%s2882_s29 + $0x8] sm:$0xff]  ;;  %s3377_s4 = sld [smem:[#allocation12_spill]]  ;;  %vm1204_vm4 = vcmask 261120   ;;  %p2364_p6 = scmp.ne.s32.totalorder %s2709_s1, 1 }
  0xfe   : > { %2609 = vset.pattern.permute.xlu0 %v2719_v34  ;;  %v1064_v41 = vld [vmem:[%s2882_s29] sm:$0xff]  ;;  %s3379_s5 = sld [smem:[#allocation13_spill]]  ;;  %v3008_v5 = vld [vmem:[%s2867_s3 + $0x8] sm:$0xff]  ;;  %v3011_v6 = vld [vmem:[%s2867_s3 + $0x10] sm:$0xff] }
  0xff   : > { %v3018_v7 = vld [vmem:[%s2867_s3 + $0x18] sm:$0xff]  ;;  %v1062_v8 = vld [vmem:[%s2877_s27] sm:$0xff]  ;;  %s3384_s29 = sld [smem:[#allocation19_spill]] (!%p2364_p6) }
 0x100   : > { %v2948_v19 = vld [vmem:[#allocation2 + $0x8] sm:$0xff]  ;;  %v2967_v28 = vld [vmem:[#allocation2 + $0x18] sm:$0xff]  ;;  %2529 = vmatprep.mubr.msk.f32.mxu1 %vm1204_vm4, %v1062_v8 }
 0x101   : > { %v976_v21 = vsel %vm972_vm2, %v2948_v19, 0.0  ;;  %v991_v22 = vmul.f32 %v2948_v19, %v2948_v19  ;;  %v982_v30 = vsel %vm972_vm2, %v2967_v28, 0.0  ;;  %v993_v32 = vmul.f32 %v2967_v28, %v2967_v28 }
 0x102   : > { %v2950_v20 = vld [vmem:[#allocation2] sm:$0xff]  ;;  %977 = vadd.xlane.f32.xlu0 %v976_v21  ;;  %v2969_v29 = vld [vmem:[#allocation2 + $0x10] sm:$0xff] }
 0x103   : > { %v990_v23 = vmul.f32 %v2950_v20, %v2950_v20  ;;  %v997_v24 = vsel %vm972_vm2, %v991_v22, 0.0  ;;  %v973_v25 = vsel %vm972_vm2, %v2950_v20, 0.0  ;;  %v979_v31 = vsel %vm972_vm2, %v2969_v29, 0.0  ;;  %s3378_s22 = scalar_lea.vmem %s3377_s4, %s2852_s25 }
 0x104   : > { %998 = vadd.xlane.f32.xlu1 %v997_v24  ;;  %v992_v33 = vmul.f32 %v2969_v29, %v2969_v29  ;;  %v1003_v35 = vsel %vm972_vm2, %v993_v32, 0.0  ;;  %v2993_v59 = vld [vmem:[%s3378_s22] ss:$0 sm:$0xff]  ;;  %s3380_s6 = scalar_lea.vmem %s3379_s5, %s2852_s25 }
 0x105   : > { %v994_v26 = vsel %vm972_vm2, %v990_v23, 0.0  ;;  %v3000_v61 = vld [vmem:[%s3380_s6] ss:$0 sm:$0xff] }
 0x106   : > { %974 = vadd.xlane.f32.xlu0 %v973_v25  ;;  %v1000_v36 = vsel %vm972_vm2, %v992_v33, 0.0 }
 0x108   : > { %995 = vadd.xlane.f32.xlu1 %v994_v26 }
 0x10a   : > { %983 = vadd.xlane.f32.xlu0 %v982_v30 }
 0x10c   : > { %980 = vadd.xlane.f32.xlu1 %v979_v31 }
 0x10e   : > { %1004 = vadd.xlane.f32.xlu0 %v1003_v35 }
 0x110   : > { %1001 = vadd.xlane.f32.xlu1 %v1000_v36 }
 0x121   : > { %1078 = vperm.xlu1 %2610, %v1060_v37  }
 0x124   : > { %1083 = vperm.xlu0 %2609, %v1061_v39  }
 0x125   : > { %1073 = vperm.xlu1 %2610, %v1059_v38  }
 0x129   : > { %1068 = vperm.xlu1 %2610, %v1058_v40  }
 0x12d   : > { %1290 = vperm.xlu1 %2610, %v1064_v41  }
 0x131   : > { %1295 = vperm.xlu1 %2610, %v1065_v42  }
 0x18b   : > { %v978_v43 = vpop.xlane.xlu0 %977 }
 0x18c   : > { %v987_v44 = vmul.f32 0.015625, %v978_v43 }
 0x18d   : > { %v999_v45 = vpop.xlane.xlu1 %998 }
 0x18e   : > { %v1011_v46 = vmul.f32 %v987_v44, %v987_v44  ;;  %v1007_v47 = vmul.f32 0.015625, %v999_v45  ;;  %v1019_v57 = vsub.f32 %v2948_v19, %v987_v44 }
 0x18f   : > { %v975_v48 = vpop.xlane.xlu0 %974 }
 0x190   : > { %v1015_v49 = vsub.f32 %v1007_v47, %v1011_v46  ;;  %v986_v50 = vmul.f32 0.015625, %v975_v48 }
 0x191   : > { %v996_v51 = vpop.xlane.xlu1 %995 }
 0x192   : > { %v1023_v52 = vadd.f32 1e-05, %v1015_v49  ;;  %v1010_v53 = vmul.f32 %v986_v50, %v986_v50  ;;  %v1006_v54 = vmul.f32 0.015625, %v996_v51  ;;  %v1018_v62 = vsub.f32 %v2950_v20, %v986_v50 }
 0x193   : > { %v984_v10 = vpop.xlane.xlu0 %983 }
 0x194   : > { %2611 = vrsqrt.f32 %v1023_v52  ;;  %v1014_v55 = vsub.f32 %v1006_v54, %v1010_v53  ;;  %v989_v13 = vmul.f32 0.015625, %v984_v10 }
 0x195   : > { %v981_v9 = vpop.xlane.xlu1 %980 }
 0x196   : > { %v1022_v56 = vadd.f32 1e-05, %v1014_v55  ;;  %v988_v14 = vmul.f32 0.015625, %v981_v9  ;;  %v1013_v16 = vmul.f32 %v989_v13, %v989_v13  ;;  %v1021_v46 = vsub.f32 %v2967_v28, %v989_v13  ;;  %v3042_v9 = vld [vmem:[%s2877_s27 + $0x8] sm:$0xff] }
 0x197   : > { %v1005_v15 = vpop.xlane.xlu0 %1004 }
 0x198   : > { %2613 = vrsqrt.f32 %v1022_v56  ;;  %v1009_v17 = vmul.f32 0.015625, %v1005_v15  ;;  %v1012_v18 = vmul.f32 %v988_v14, %v988_v14  ;;  %v1020_v50 = vsub.f32 %v2969_v29, %v988_v14 }
 0x199   : > { %v1002_v11 = vpop.xlane.xlu1 %1001 }
 0x19a   : > { %v1008_v21 = vmul.f32 0.015625, %v1002_v11  ;;  %v1017_v23 = vsub.f32 %v1009_v17, %v1013_v16 }
 0x19c   : > { %v1016_v24 = vsub.f32 %v1008_v21, %v1012_v18  ;;  %v1025_v31 = vadd.f32 1e-05, %v1017_v23 }
 0x19d   : > { %v3025_v12 = vpop.permute.xlu1 %1078 }
 0x19e   : > { %v1024_v34 = vadd.f32 1e-05, %v1016_v24  ;;  %2615 = vrsqrt.f32 %v1025_v31 }
 0x19f   : > { %v3032_v33 = vpop.permute.xlu0 %1083 }
 0x1a0   : > { %2617 = vrsqrt.f32 %v1024_v34 }
 0x1a1   : > { %v2612_v58 = vpop.eup %2611  ;;  %v3027_v22 = vpop.permute.xlu1 %1073 }
 0x1a2   : > { %v1031_v60 = vmul.f32 %v2612_v58, %v1019_v57 }
 0x1a4   : > { %v1041_v63 = vmul.f32 %v2993_v59, %v1031_v60 }
 0x1a5   : > { %v2614_v0 = vpop.eup %2613  ;;  %v3029_v26 = vpop.permute.xlu1 %1068 }
 0x1a6   : > { %v1051_v1 = vadd.f32 %v3000_v61, %v1041_v63  ;;  %v1030_v2 = vmul.f32 %v2614_v0, %v1018_v62 }
 0x1a8   : > { %2490 = vmatprep.subr.mxu0 %v1051_v1  ;;  %v1040_v3 = vmul.f32 %v2993_v59, %v1030_v2 }
 0x1a9   : > { %2491 = vmatpush3.msra.mxu0 %v1051_v1 }
 0x1aa   : > { %v1050_v4 = vadd.f32 %v3000_v61, %v1040_v3 }
 0x1ab   : > { %v2616_v44 = vpop.eup %2615 }
 0x1ac   : > { %2492 = vmatprep.subr.mxu0 %v1050_v4  ;;  %v1033_v54 = vmul.f32 %v2616_v44, %v1021_v46 }
 0x1ad   : > { %2493 = vmatpush3.msra.mxu0 %v1050_v4  ;;  %v2618_v45 = vpop.eup %2617 }
 0x1ae   : > { %2495 = vmatmul.mubr.msk.f32.vlgmr.msra.gmra.mxu0 %vm1086_vm3, %v3008_v5  ;;  %v1032_v0 = vmul.f32 %v2618_v45, %v1020_v50  ;;  %v1043_v3 = vmul.f32 %v2993_v59, %v1033_v54  ;;  %v1588_v54 = vld [vmem:[%s2897_s17 + $0x70] sm:$0xff] }
 0x1af   : > { %2497 = vmatprep.mubr.msk.f32.mxu0 %vm1086_vm3, %v3011_v6 }
 0x1b0   : > { %v1053_v10 = vadd.f32 %v3000_v61, %v1043_v3  ;;  %v1577_v3 = vld [vmem:[%s2897_s17 + $0x18] sm:$0xff] }
 0x1b2   : > { %2498 = vmatmul.mubr.msk.f32.gmra.mxu0 %vm1086_vm3, %v3018_v7 }
 0x1b3   : > { %2508 = vmatprep.mubr.msk.f32.mxu0 %vm1204_vm4, %v1062_v8  ;;  %v1042_v8 = vmul.f32 %v2993_v59, %v1032_v0  ;;  %v3056_v59 = vpop.permute.xlu1 %1290  ;;  %v1580_v0 = vld [vmem:[%s2897_s17 + $0x30] sm:$0xff] }
 0x1b5   : > { %v1052_v11 = vadd.f32 %v3000_v61, %v1042_v8  ;;  %v2720_v8 = vmov 0.0  }
 0x1b7   : > { %v3059_v14 = vpop.permute.xlu1 %1295 }
 0x26e   : > { %v2496_v25 = vpop.f32.mrf.mxu0 }
 0x26f   : > { %v1171_v30 = vadd.f32 %v2496_v25, %v3027_v22 }
 0x270   : > { %v1165_v32 = vpop.f32.mrf.mxu0 }
 0x271   : > { %v1166_v35 = vadd.f32 %v1165_v32, %v3029_v26  ;;  %v1189_v36 = vmul.f32 0.70710677, %v1171_v30  ;;  %v1185_v60 = vmul.f32 0.5, %v1171_v30 }
 0x272   : > { %v2499_v37 = vpop.f32.mrf.mxu0 }
 0x273   : > { %v1181_v38 = vadd.f32 %v2499_v37, %v3032_v33  ;;  %v1188_v39 = vmul.f32 0.70710677, %v1166_v35  ;;  %2619 = verf.f32 %v1189_v36  ;;  %v1184_v1 = vmul.f32 0.5, %v1166_v35 }
 0x274   : > { %v1175_v40 = vpop.f32.mrf.mxu0 }
 0x275   : > { %v1191_v41 = vmul.f32 0.70710677, %v1181_v38  ;;  %v1176_v42 = vadd.f32 %v1175_v40, %v3025_v12  ;;  %v1187_v51 = vmul.f32 0.5, %v1181_v38 }
 0x277   : > { %2621 = verf.f32 %v1191_v41  ;;  %v1190_v43 = vmul.f32 0.70710677, %v1176_v42  ;;  %v1186_v55 = vmul.f32 0.5, %v1176_v42 }
 0x278   : > { %2623 = verf.f32 %v1188_v39 }
 0x279   : > { %2625 = verf.f32 %v1190_v43 }
 0x280   : > { %v2620_v47 = vpop.eup %2619 }
 0x281   : > { %v1197_v58 = vadd.f32 1.0, %v2620_v47 }
 0x283   : > { %v1201_v2 = vmul.f32 %v1197_v58, %v1185_v60  ;;  %v1584_v58 = vld [vmem:[%s2897_s17 + $0x50] sm:$0xff]  ;;  %v1583_v60 = vld [vmem:[%s2897_s17 + $0x48] sm:$0xff] }
 0x284   : > { %v2622_v48 = vpop.eup %2621 }
 0x285   : > { %v2624_v49 = vpop.eup %2623  ;;  %v1199_v52 = vadd.f32 1.0, %v2622_v48 }
 0x286   : > { %v2626_v53 = vpop.eup %2625  ;;  %v1196_v63 = vadd.f32 1.0, %v2624_v49 }
 0x287   : > { %v1203_v56 = vmul.f32 %v1199_v52, %v1187_v51  ;;  %v1198_v57 = vadd.f32 1.0, %v2626_v53  ;;  %v1589_v53 = vld [vmem:[%s2897_s17 + $0x78] sm:$0xff] }
 0x288   : > { %v1200_v4 = vmul.f32 %v1196_v63, %v1184_v1  ;;  %v1581_v63 = vld [vmem:[%s2897_s17 + $0x38] sm:$0xff]  ;;  %v1579_v1 = vld [vmem:[%s2897_s17 + $0x28] sm:$0xff] }
 0x289   : > { %2500 = vmatprep.subr.mxu0 %v1203_v56  ;;  %v1202_v62 = vmul.f32 %v1198_v57, %v1186_v55  ;;  %v1587_v55 = vld [vmem:[%s2897_s17 + $0x68] sm:$0xff]  ;;  %v1585_v57 = vld [vmem:[%s2897_s17 + $0x58] sm:$0xff] }
 0x28a   : > { %2501 = vmatpush3.msra.mxu0 %v1203_v56  ;;  %v1586_v56 = vld [vmem:[%s2897_s17 + $0x60] sm:$0xff] }
 0x28b   : > { %2502 = vmatprep.subr.mxu0 %v1202_v62 }
 0x28c   : > { %2503 = vmatpush3.msra.mxu0 %v1202_v62  ;;  %v1582_v62 = vld [vmem:[%s2897_s17 + $0x40] sm:$0xff] }
 0x28d   : > { %2504 = vmatprep.subr.mxu0 %v1201_v2 }
 0x28e   : > { %2505 = vmatpush3.msra.mxu0 %v1201_v2  ;;  %v1578_v2 = vld [vmem:[%s2897_s17 + $0x20] sm:$0xff] }
 0x28f   : > { %2506 = vmatprep.subr.mxu0 %v1200_v4 }
 0x290   : > { %2507 = vmatpush3.msra.mxu0 %v1200_v4  ;;  %v1576_v4 = vld [vmem:[%s2897_s17 + $0x10] sm:$0xff] }
 0x291   : > { %2509 = vmatmul.mubr.msk.f32.vlgmr.msra.gmra.mxu0 %vm1204_vm4, %v3042_v9  ;;  %2511 = vmatprep.subr.mxu0 %v1053_v10 }
 0x292   : > { %2512 = vmatpush3.msra.mxu0 %v1053_v10  ;;  %2515 = vmatprep.mubr.msk.f32.mxu0 %vm1086_vm3, %v2963_v27  ;;  %v1574_v10 = vld [vmem:[%s2897_s17] sm:$0xff] }
 0x293   : > { %2513 = vmatprep.subr.mxu0 %v1052_v11 }
 0x294   : > { %2514 = vmatpush3.msra.mxu0 %v1052_v11  ;;  %v1774_v11 = vld [vmem:[%s2912_s2 + $0xf8] sm:$0xff] }
 0x295   : > { %2516 = vmatmul.mubr.msk.f32.vlgmr.msra.gmra.mxu0 %vm1086_vm3, %v3008_v5  ;;  %1630 = vmatprep.subr.mxu0 %v1589_v53 }
 0x296   : > { %2518 = vmatprep.mubr.msk.f32.mxu0 %vm1086_vm3, %v3011_v6  ;;  %1631 = vmatpush1.msra.mxu0 %v1588_v54  ;;  %v1770_v54 = vld [vmem:[%s2912_s2 + $0xd8] sm:$0xff] }
 0x297   : > { %1632 = vmatprep.subr.mxu0 %v1587_v55  ;;  %v1754_v55 = vld [vmem:[%s2912_s2 + $0x58] sm:$0xff] }
 0x298   : > { %1633 = vmatpush1.msra.mxu0 %v1586_v56 }
 0x299   : > { %2519 = vmatmul.mubr.msk.f32.gmra.mxu0 %vm1086_vm3, %v3018_v7  ;;  %1634 = vmatprep.subr.mxu0 %v1585_v57  ;;  %v1769_v57 = vld [vmem:[%s2912_s2 + $0xd0] sm:$0xff] }
 0x29a   : > { %1635 = vmatpush1.msra.mxu0 %v1584_v58  ;;  %1678 = vmatprep.mubr.f32.mxu0 %v2720_v8  ;;  %v1753_v58 = vld [vmem:[%s2912_s2 + $0x50] sm:$0xff] }
 0x29b   : > { %1636 = vmatprep.subr.mxu0 %v1583_v60 }
 0x29c   : > { %1637 = vmatpush1.msra.mxu0 %v1582_v62  ;;  %v1768_v62 = vld [vmem:[%s2912_s2 + $0xc8] sm:$0xff] }
 0x29d   : > { %1638 = vmatprep.subr.mxu0 %v1581_v63  ;;  %v1752_v63 = vld [vmem:[%s2912_s2 + $0x48] sm:$0xff] }
 0x29e   : > { %1639 = vmatpush1.msra.mxu0 %v1580_v0  ;;  %v1767_v0 = vld [vmem:[%s2912_s2 + $0xc0] sm:$0xff] }
 0x29f   : > { %1640 = vmatprep.subr.mxu0 %v1579_v1  ;;  %v1751_v1 = vld [vmem:[%s2912_s2 + $0x40] sm:$0xff] }
 0x2a0   : > { %1641 = vmatpush1.msra.mxu0 %v1578_v2  ;;  %v1766_v2 = vld [vmem:[%s2912_s2 + $0xb8] sm:$0xff] }
 0x2a1   : > { %1642 = vmatprep.subr.mxu0 %v1577_v3  ;;  %v1750_v3 = vld [vmem:[%s2912_s2 + $0x38] sm:$0xff] }
 0x2a2   : > { %1643 = vmatpush1.msra.mxu0 %v1576_v4  ;;  %v1765_v4 = vld [vmem:[%s2912_s2 + $0xb0] sm:$0xff] }
 0x351   : > { %v2510_v13 = vpop.f32.mrf.mxu0 }
 0x352   : > { %v1287_v61 = vadd.f32 %v2510_v13, %v2948_v19  ;;  %v1758_v13 = vld [vmem:[%s2912_s2 + $0x78] sm:$0xff] }
 0x353   : > { %v1277_v15 = vpop.f32.mrf.mxu0 }
 0x354   : > { %v1299_v27 = vadd.f32 %v3059_v14, %v1287_v61  ;;  %v1286_v16 = vadd.f32 %v1277_v15, %v2950_v20  ;;  %v1773_v61 = vld [vmem:[%s2912_s2 + $0xf0] sm:$0xff] }
 0x355   : > { %v2517_v17 = vpop.f32.mrf.mxu0  ;;  %v1757_v15 = vld [vmem:[%s2912_s2 + $0x70] sm:$0xff] }
 0x356   : > { %1301 = vst.msk [vmem:[#allocation2 + $0x8] sm:$0xff] %vm972_vm2, %v1299_v27  ;;  %v1298_v5 = vadd.f32 %v3056_v59, %v1286_v16  ;;  %v1374_v6 = vadd.f32 %v2517_v17, %v3027_v22  ;;  %v1772_v27 = vld [vmem:[%s2912_s2 + $0xe8] sm:$0xff] }
 0x357   : > { %v1368_v7 = vpop.f32.mrf.mxu0  ;;  %v1756_v16 = vld [vmem:[%s2912_s2 + $0x68] sm:$0xff] }
 0x358   : > { %1300 = vst.msk [vmem:[#allocation2] sm:$0xff] %vm972_vm2, %v1298_v5  ;;  %v1369_v18 = vadd.f32 %v1368_v7, %v3029_v26  ;;  %v1392_v19 = vmul.f32 0.70710677, %v1374_v6  ;;  %v1388_v47 = vmul.f32 0.5, %v1374_v6 }
 0x359   : > { %v2520_v21 = vpop.f32.mrf.mxu0 }
 0x35a   : > { %v1384_v23 = vadd.f32 %v2520_v21, %v3032_v33  ;;  %v1391_v24 = vmul.f32 0.70710677, %v1369_v18  ;;  %2627 = verf.f32 %v1392_v19  ;;  %v1387_v50 = vmul.f32 0.5, %v1369_v18 }
 0x35b   : > { %v1378_v25 = vpop.f32.mrf.mxu0 }
 0x35c   : > { %v1394_v30 = vmul.f32 0.70710677, %v1384_v23  ;;  %v1379_v20 = vadd.f32 %v1378_v25, %v3025_v12  ;;  %v1390_v40 = vmul.f32 0.5, %v1384_v23 }
 0x35d   : > { %v3076_v33 = vld [vmem:[#allocation2 + $0x8] sm:$0xff] }
 0x35e   : > { %2629 = verf.f32 %v1394_v30  ;;  %v1393_v31 = vmul.f32 0.70710677, %v1379_v20  ;;  %v1497_v12 = vsel %vm972_vm2, %v3076_v33, 0.0  ;;  %v1511_v35 = vmul.f32 %v3076_v33, %v3076_v33 }
 0x35f   : > { %2631 = verf.f32 %v1391_v24  ;;  %v3070_v32 = vld [vmem:[#allocation2] sm:$0xff]  ;;  %v1389_v43 = vmul.f32 0.5, %v1379_v20 }
 0x360   : > { %2633 = verf.f32 %v1393_v31  ;;  %v1494_v22 = vsel %vm972_vm2, %v3070_v32, 0.0  ;;  %v1510_v26 = vmul.f32 %v3070_v32, %v3070_v32  ;;  %v1517_v36 = vsel %vm972_vm2, %v1511_v35, 0.0 }
 0x361   : > { %1495 = vadd.xlane.f32.xlu1 %v1494_v22 }
 0x362   : > { %v1514_v34 = vsel %vm972_vm2, %v1510_v26, 0.0 }
 0x363   : > { %1515 = vadd.xlane.f32.xlu0 %v1514_v34 }
 0x365   : > { %1498 = vadd.xlane.f32.xlu1 %v1497_v12 }
 0x367   : > { %v2628_v37 = vpop.eup %2627 }
 0x368   : > { %v1400_v46 = vadd.f32 1.0, %v2628_v37 }
 0x369   : > { %1518 = vadd.xlane.f32.xlu1 %v1517_v36  ;;  %v3122_v36 = vld [vmem:[%s824_s20] ss:$0 sm:$0xff]  ;;  %s3382_s20 = sld [smem:[#allocation17_spill]] (!%p2364_p6) }
 0x36a   : > { %v1404_v51 = vmul.f32 %v1400_v46, %v1388_v47 }
 0x36b   : > { %v2630_v38 = vpop.eup %2629 }
 0x36c   : > { %v2632_v39 = vpop.eup %2631  ;;  %v1402_v41 = vadd.f32 1.0, %v2630_v38 }
 0x36d   : > { %v2634_v42 = vpop.eup %2633  ;;  %v1399_v49 = vadd.f32 1.0, %v2632_v39 }
 0x36e   : > { %v1406_v44 = vmul.f32 %v1402_v41, %v1390_v40  ;;  %v1401_v45 = vadd.f32 1.0, %v2634_v42 }
 0x36f   : > { %v1403_v52 = vmul.f32 %v1399_v49, %v1387_v50 }
 0x370   : > { %2521 = vmatprep.subr.mxu1 %v1406_v44  ;;  %v1405_v48 = vmul.f32 %v1401_v45, %v1389_v43 }
 0x371   : > { %2522 = vmatpush3.msra.mxu1 %v1406_v44 }
 0x372   : > { %2523 = vmatprep.subr.mxu1 %v1405_v48 }
 0x373   : > { %2524 = vmatpush3.msra.mxu1 %v1405_v48 }
 0x374   : > { %2525 = vmatprep.subr.mxu1 %v1404_v51 }
 0x375   : > { %2526 = vmatpush3.msra.mxu1 %v1404_v51 }
 0x376   : > { %2527 = vmatprep.subr.mxu1 %v1403_v52 }
 0x377   : > { %2528 = vmatpush3.msra.mxu1 %v1403_v52  ;;  %v1771_v52 = vld [vmem:[%s2912_s2 + $0xe0] sm:$0xff] }
 0x378   : > { %2530 = vmatmul.mubr.msk.f32.vlgmr.msra.gmra.mxu1 %vm1204_vm4, %v3042_v9  ;;  %v1575_v9 = vld [vmem:[%s2897_s17 + $0x8] sm:$0xff]  ;;  %2414 = vmatprep.subr.mxu1 %v1774_v11  ;;  %s3381_s17 = scalar_lea.vmem %s3338_s9, %s2852_s25  ;;  %s3383_s25 = sld [smem:[#allocation18_spill]] (!%p2364_p6) }
 0x379   : > { %1644 = vmatprep.subr.mxu0 %v1575_v9  ;;  %2415 = vmatpush3.msra.mxu1 %v1758_v13  ;;  %v3115_v12 = vld [vmem:[%s3381_s17] ss:$0 sm:$0xff]  ;;  %v1749_v9 = vld [vmem:[%s2912_s2 + $0x30] sm:$0xff]  ;;  %v1748_v11 = vld [vmem:[%s2912_s2 + $0x28] sm:$0xff] }
 0x37a   : > { %1645 = vmatpush1.msra.mxu0 %v1574_v10  ;;  %2416 = vmatprep.subr.mxu1 %v1773_v61  ;;  %v1764_v10 = vld [vmem:[%s2912_s2 + $0xa8] sm:$0xff]  ;;  %v1763_v13 = vld [vmem:[%s2912_s2 + $0xa0] sm:$0xff] }
 0x37b   : > { %2417 = vmatpush3.msra.mxu1 %v1757_v15  ;;  %v1747_v61 = vld [vmem:[%s2912_s2 + $0x20] sm:$0xff]  ;;  %v1762_v15 = vld [vmem:[%s2912_s2 + $0x98] sm:$0xff] }
 0x37c   : > { %2418 = vmatprep.subr.mxu1 %v1772_v27  ;;  %v1746_v27 = vld [vmem:[%s2912_s2 + $0x18] sm:$0xff] }
 0x37d   : > { %2419 = vmatpush3.msra.mxu1 %v1756_v16  ;;  %v1761_v16 = vld [vmem:[%s2912_s2 + $0x90] sm:$0xff] }
 0x37e   : > { %2420 = vmatprep.subr.mxu1 %v1771_v52 }
 0x3ea   : > { %v1496_v17 = vpop.xlane.xlu1 %1495 }
 0x3eb   : > { %v1506_v5 = vmul.f32 0.015625, %v1496_v17  ;;  %v1745_v17 = vld [vmem:[%s2912_s2 + $0x10] sm:$0xff] }
 0x3ec   : > { %v1516_v6 = vpop.xlane.xlu0 %1515 }
 0x3ed   : > { %v1530_v7 = vmul.f32 %v1506_v5, %v1506_v5  ;;  %v1526_v18 = vmul.f32 0.015625, %v1516_v6  ;;  %v1538_v26 = vsub.f32 %v3070_v32, %v1506_v5  ;;  %v1760_v5 = vld [vmem:[%s2912_s2 + $0x88] sm:$0xff] }
 0x3ee   : > { %v1499_v19 = vpop.xlane.xlu1 %1498  ;;  %v1744_v6 = vld [vmem:[%s2912_s2 + $0x8] sm:$0xff] }
 0x3ef   : > { %v1534_v21 = vsub.f32 %v1526_v18, %v1530_v7  ;;  %v1507_v23 = vmul.f32 0.015625, %v1499_v19  ;;  %v1759_v7 = vld [vmem:[%s2912_s2 + $0x80] sm:$0xff]  ;;  %v1592_v19 = vlaneseq }
 0x3f0   : > { %v1743_v18 = vld [vmem:[%s2912_s2] sm:$0xff] }
 0x3f1   : > { %v1542_v24 = vadd.f32 1e-05, %v1534_v21  ;;  %v1531_v30 = vmul.f32 %v1507_v23, %v1507_v23  ;;  %v1539_v38 = vsub.f32 %v3076_v33, %v1507_v23  ;;  %v1593_v21 = vshrl.u32 %v1592_v19, 7 }
 0x3f2   : > { %v1519_v25 = vpop.xlane.xlu1 %1518 }
 0x3f3   : > { %2635 = vrsqrt.f32 %v1542_v24  ;;  %v1527_v20 = vmul.f32 0.015625, %v1519_v25  ;;  %v1594_v23 = vsub.s32 0, %v1593_v21  ;;  %v1590_v24 = vld [vmem:[%s2902_s24] sm:$0x3]  ;;  %v1598_v25 = vsub.s32 1, %v1593_v21 }
 0x3f5   : > { %v1535_v31 = vsub.f32 %v1527_v20, %v1531_v30  ;;  %v3180_v30 = vrot.slane %v1590_v24, %v1594_v23  ;;  %v3182_v20 = vrot.slane %v1590_v24, %v1598_v25 }
 0x3f7   : > { %v1543_v22 = vadd.f32 1e-05, %v1535_v31 }
 0x3f9   : > { %2637 = vrsqrt.f32 %v1543_v22 }
 0x400   : > { %v2636_v34 = vpop.eup %2635 }
 0x401   : > { %v1550_v35 = vmul.f32 %v2636_v34, %v1538_v26 }
 0x403   : > { %v1560_v37 = vmul.f32 %v3115_v12, %v1550_v35 }
 0x405   : > { %v1570_v39 = vadd.f32 %v3122_v36, %v1560_v37 }
 0x406   : > { %v2638_v40 = vpop.eup %2637 }
 0x407   : > { %2359 = vmatmul.mubr.msk.f32.vlgmr.msra.gmra.mxu0 %vm972_vm2, %v1570_v39  ;;  %v1551_v41 = vmul.f32 %v2638_v40, %v1539_v38 }
 0x408   : > { %1684 = vmatprep.mubr.f32.mxu0 %v2720_v8 }
 0x409   : > { %v1561_v42 = vmul.f32 %v3115_v12, %v1551_v41 }
 0x40b   : > { %v1571_v43 = vadd.f32 %v3122_v36, %v1561_v42 }
 0x40d   : > { %2360 = vmatmul.mubr.msk.f32.gmra.mxu0 %vm972_vm2, %v1571_v43 }
 0x40e   : > { %1690 = vmatprep.mubr.f32.mxu0 %v2720_v8 }
 0x438   : > { %v2531_v44 = vpop.f32.mrf.mxu1 }
 0x439   : > { %v1483_v45 = vadd.f32 %v2531_v44, %v2967_v28 }
 0x43a   : > { %v1473_v46 = vpop.f32.mrf.mxu1 }
 0x43b   : > { %v1485_v47 = vadd.f32 %v1483_v45, %v3059_v14  ;;  %v1482_v48 = vadd.f32 %v1473_v46, %v2969_v29  ;;  %v1755_v29 = vld [vmem:[%s2912_s2 + $0x60] sm:$0xff] }
 0x43c   : > { %2421 = vmatpush3.msra.mxu1 %v1755_v29 }
 0x43d   : > { %1487 = vst.msk [vmem:[#allocation2 + $0x18] sm:$0xff] %vm972_vm2, %v1485_v47  ;;  %v1484_v49 = vadd.f32 %v1482_v48, %v3056_v59  ;;  %2422 = vmatprep.subr.mxu1 %v1770_v54 }
 0x43e   : > { %2423 = vmatpush3.msra.mxu1 %v1754_v55 }
 0x43f   : > { %1486 = vst.msk [vmem:[#allocation2 + $0x10] sm:$0xff] %vm972_vm2, %v1484_v49  ;;  %2424 = vmatprep.subr.mxu1 %v1769_v57 }
 0x440   : > { %2425 = vmatpush3.msra.mxu1 %v1753_v58 }
 0x441   : > { %2426 = vmatprep.subr.mxu1 %v1768_v62 }
 0x442   : > { %2427 = vmatpush3.msra.mxu1 %v1752_v63 }
 0x443   : > { %2428 = vmatprep.subr.mxu1 %v1767_v0 }
 0x444   : > { %v3141_v51 = vld [vmem:[#allocation2 + $0x18] sm:$0xff]  ;;  %2429 = vmatpush3.msra.mxu1 %v1751_v1 }
 0x445   : > { %v1513_v53 = vmul.f32 %v3141_v51, %v3141_v51  ;;  %v1503_v56 = vsel %vm972_vm2, %v3141_v51, 0.0  ;;  %2430 = vmatprep.subr.mxu1 %v1766_v2 }
 0x446   : > { %v3139_v50 = vld [vmem:[#allocation2 + $0x10] sm:$0xff]  ;;  %2431 = vmatpush3.msra.mxu1 %v1750_v3 }
 0x447   : > { %v1500_v28 = vsel %vm972_vm2, %v3139_v50, 0.0  ;;  %v1512_v14 = vmul.f32 %v3139_v50, %v3139_v50  ;;  %v1523_v60 = vsel %vm972_vm2, %v1513_v53, 0.0  ;;  %2432 = vmatprep.subr.mxu1 %v1765_v4 }
 0x448   : > { %1501 = vadd.xlane.f32.xlu0 %v1500_v28  ;;  %2433 = vmatpush3.msra.mxu1 %v1749_v9 }
 0x449   : > { %v1520_v59 = vsel %vm972_vm2, %v1512_v14, 0.0  ;;  %2434 = vmatprep.subr.mxu1 %v1764_v10 }
 0x44a   : > { %1521 = vadd.xlane.f32.xlu1 %v1520_v59  ;;  %2435 = vmatpush3.msra.mxu1 %v1748_v11 }
 0x44b   : > { %2436 = vmatprep.subr.mxu1 %v1763_v13 }
 0x44c   : > { %1504 = vadd.xlane.f32.xlu0 %v1503_v56  ;;  %2437 = vmatpush3.msra.mxu1 %v1747_v61 }
 0x44d   : > { %2438 = vmatprep.subr.mxu1 %v1762_v15 }
 0x44e   : > { %1524 = vadd.xlane.f32.xlu1 %v1523_v60  ;;  %2439 = vmatpush3.msra.mxu1 %v1746_v27 }
 0x44f   : > { %2440 = vmatprep.subr.mxu1 %v1761_v16 }
 0x450   : > { %2441 = vmatpush3.msra.mxu1 %v1745_v17 }
 0x451   : > { %2442 = vmatprep.subr.mxu1 %v1760_v5 }
 0x452   : > { %2443 = vmatpush3.msra.mxu1 %v1744_v6 }
 0x453   : > { %2444 = vmatprep.subr.mxu1 %v1759_v7 }
 0x454   : > { %2445 = vmatpush3.msra.mxu1 %v1743_v18 }
 0x4c7   : > { %v1680_v31 = vpop.f32.mrf.mxu0 }
 0x4c8   : > { %v1681_v22 = vadd.f32 %v1680_v31, %v3180_v30  ;;  %v2363_v31 = vld [vmem:[%s841_s30] ss:$0 sm:$0xff] }
 0x4c9   : > { %v1682_v26 = vpop.f32.mrf.mxu0 }
 0x4ca   : > { %v1711_v34 = vmul.f32 0.70710677, %v1681_v22  ;;  %v1683_v35 = vadd.f32 %v1682_v26, %v3182_v20  ;;  %v1703_v63 = vmul.f32 0.5, %v1681_v22 }
 0x4cc   : > { %2639 = verf.f32 %v1711_v34  ;;  %v1712_v37 = vmul.f32 0.70710677, %v1683_v35  ;;  %v1704_v58 = vmul.f32 0.5, %v1683_v35 }
 0x4cd   : > { %v1686_v38 = vpop.f32.mrf.mxu0 }
 0x4ce   : > { %2641 = verf.f32 %v1712_v37  ;;  %v1687_v39 = vadd.f32 %v1686_v38, %v3180_v30 }
 0x4cf   : > { %v1688_v40 = vpop.f32.mrf.mxu0 }
 0x4d0   : > { %v1713_v41 = vmul.f32 0.70710677, %v1687_v39  ;;  %v1689_v42 = vadd.f32 %v1688_v40, %v3182_v20  ;;  %v1705_v11 = vmul.f32 0.5, %v1687_v39 }
 0x4d1   : > { %v1502_v43 = vpop.xlane.xlu0 %1501 }
 0x4d2   : > { %2643 = verf.f32 %v1713_v41  ;;  %v1714_v44 = vmul.f32 0.70710677, %v1689_v42  ;;  %v1508_v45 = vmul.f32 0.015625, %v1502_v43  ;;  %v1706_v9 = vmul.f32 0.5, %v1689_v42 }
 0x4d3   : > { %v1522_v46 = vpop.xlane.xlu1 %1521 }
 0x4d4   : > { %2645 = verf.f32 %v1714_v44  ;;  %v1532_v47 = vmul.f32 %v1508_v45, %v1508_v45  ;;  %v1528_v48 = vmul.f32 0.015625, %v1522_v46  ;;  %v1540_v15 = vsub.f32 %v3139_v50, %v1508_v45 }
 0x4d5   : > { %v1505_v49 = vpop.xlane.xlu0 %1504 }
 0x4d6   : > { %v1536_v28 = vsub.f32 %v1528_v48, %v1532_v47  ;;  %v1509_v14 = vmul.f32 0.015625, %v1505_v49 }
 0x4d7   : > { %v1525_v52 = vpop.xlane.xlu1 %1524 }
 0x4d8   : > { %v1544_v29 = vadd.f32 1e-05, %v1536_v28  ;;  %v1533_v59 = vmul.f32 %v1509_v14, %v1509_v14  ;;  %v1529_v53 = vmul.f32 0.015625, %v1525_v52  ;;  %v1541_v17 = vsub.f32 %v3141_v51, %v1509_v14 }
 0x4d9   : > { %v2640_v54 = vpop.eup %2639 }
 0x4da   : > { %2647 = vrsqrt.f32 %v1544_v29  ;;  %v1537_v55 = vsub.f32 %v1529_v53, %v1533_v59  ;;  %v1727_v57 = vadd.f32 1.0, %v2640_v54 }
 0x4db   : > { %v2642_v56 = vpop.eup %2641 }
 0x4dc   : > { %v1545_v60 = vadd.f32 1e-05, %v1537_v55  ;;  %v1728_v62 = vadd.f32 1.0, %v2642_v56  ;;  %v1735_v2 = vmul.f32 %v1727_v57, %v1703_v63 }
 0x4de   : > { %2649 = vrsqrt.f32 %v1545_v60  ;;  %v1736_v0 = vmul.f32 %v1728_v62, %v1704_v58 }
 0x4df   : > { %v2644_v1 = vpop.eup %2643 }
 0x4e0   : > { %1839 = vmatprep.mubr.f32.mxu1 %v1736_v0  ;;  %v1729_v4 = vadd.f32 1.0, %v2644_v1 }
 0x4e1   : > { %v2646_v3 = vpop.eup %2645  ;;  %1840 = vmatmul.mubr.f32.vlgmr.msra.gmra.mxu1 %v1735_v2 }
 0x4e2   : > { %v1730_v10 = vadd.f32 1.0, %v2646_v3  ;;  %v1737_v61 = vmul.f32 %v1729_v4, %v1705_v11 }
 0x4e4   : > { %v1738_v13 = vmul.f32 %v1730_v10, %v1706_v9 }
 0x4e6   : > { %1844 = vmatprep.mubr.f32.mxu1 %v1738_v13 }
 0x4e7   : > { %v2648_v27 = vpop.eup %2647  ;;  %1845 = vmatmul.mubr.f32.gmra.mxu1 %v1737_v61 }
 0x4e8   : > { %v1552_v16 = vmul.f32 %v2648_v27, %v1540_v15 }
 0x4ea   : > { %v1562_v5 = vmul.f32 %v3115_v12, %v1552_v16 }
 0x4eb   : > { %v2650_v6 = vpop.eup %2649 }
 0x4ec   : > { %v1572_v7 = vadd.f32 %v3122_v36, %v1562_v5  ;;  %v1553_v18 = vmul.f32 %v2650_v6, %v1541_v17 }
 0x4ee   : > { %2361 = vmatmul.mubr.msk.f32.gmra.mxu0 %vm972_vm2, %v1572_v7  ;;  %v1563_v19 = vmul.f32 %v3115_v12, %v1553_v18 }
 0x4ef   : > { %1696 = vmatprep.mubr.f32.mxu0 %v2720_v8 }
 0x4f0   : > { %v1573_v21 = vadd.f32 %v3122_v36, %v1563_v19 }
 0x4f2   : > { %2362 = vmatmul.mubr.msk.f32.gmra.mxu0 %vm972_vm2, %v1573_v21 }
 0x5a1   : > { %v2446_v23 = vpop.f32.mrf.mxu1 }
 0x5a3   : > { %v2447_v24 = vpop.f32.mrf.mxu1 }
 0x5a4   : > { %v2448_v25 = vadd.f32 %v2447_v24, %v2446_v23 }
 0x5a6   : > { %v1860_v22 = vadd.f32 %v2448_v25, %v3070_v32 }
 0x5a7   : > { %v2449_v26 = vpop.f32.mrf.mxu1 }
 0x5a8   : > { %v3203_v34 = vadd.f32 %v2363_v31, %v1860_v22 }
 0x5a9   : > { %v2450_v12 = vpop.f32.mrf.mxu1 }
 0x5aa   : > { %1875 = vst.msk [vmem:[#allocation2] sm:$0xff] %vm972_vm2, %v3203_v34  ;;  %v2451_v8 = vadd.f32 %v2450_v12, %v2449_v26 }
 0x5ac   : > { %v1861_v36 = vadd.f32 %v2451_v8, %v3076_v33 }
 0x5ae   : > { %v3208_v35 = vadd.f32 %v2363_v31, %v1861_v36  ;;  %v1692_v37 = vpop.f32.mrf.mxu0 }
 0x5af   : > { %v1693_v38 = vadd.f32 %v1692_v37, %v3180_v30 }
 0x5b0   : > { %1876 = vst.msk [vmem:[#allocation2 + $0x8] sm:$0xff] %vm972_vm2, %v3208_v35  ;;  %v1694_v39 = vpop.f32.mrf.mxu0 }
 0x5b1   : > { %v1715_v32 = vmul.f32 0.70710677, %v1693_v38  ;;  %v1695_v40 = vadd.f32 %v1694_v39, %v3182_v20  ;;  %v1707_v29 = vmul.f32 0.5, %v1693_v38 }
 0x5b2   : > { %v1698_v41 = vpop.f32.mrf.mxu0 }
 0x5b3   : > { %2651 = verf.f32 %v1715_v32  ;;  %v1716_v42 = vmul.f32 0.70710677, %v1695_v40  ;;  %v1699_v43 = vadd.f32 %v1698_v41, %v3180_v30  ;;  %v1708_v28 = vmul.f32 0.5, %v1695_v40 }
 0x5b4   : > { %v1700_v44 = vpop.f32.mrf.mxu0 }
 0x5b5   : > { %2653 = verf.f32 %v1716_v42  ;;  %v1717_v33 = vmul.f32 0.70710677, %v1699_v43  ;;  %v1701_v45 = vadd.f32 %v1700_v44, %v3182_v20  ;;  %v1709_v57 = vmul.f32 0.5, %v1699_v43 }
 0x5b7   : > { %2655 = verf.f32 %v1717_v33  ;;  %v1718_v46 = vmul.f32 0.70710677, %v1701_v45  ;;  %v1710_v30 = vmul.f32 0.5, %v1701_v45 }
 0x5b9   : > { %2657 = verf.f32 %v1718_v46 }
 0x5c0   : > { %v2652_v47 = vpop.eup %2651 }
 0x5c1   : > { %v1731_v49 = vadd.f32 1.0, %v2652_v47 }
 0x5c2   : > { %v2654_v48 = vpop.eup %2653 }
 0x5c3   : > { %v1732_v14 = vadd.f32 1.0, %v2654_v48  ;;  %v1739_v54 = vmul.f32 %v1731_v49, %v1707_v29 }
 0x5c4   : > { %v2656_v52 = vpop.eup %2655 }
 0x5c5   : > { %v1740_v59 = vmul.f32 %v1732_v14, %v1708_v28  ;;  %v1733_v55 = vadd.f32 1.0, %v2656_v52 }
 0x5c6   : > { %v2658_v53 = vpop.eup %2657 }
 0x5c7   : > { %1849 = vmatprep.mubr.f32.mxu1 %v1740_v59  ;;  %v1734_v56 = vadd.f32 1.0, %v2658_v53  ;;  %v1741_v58 = vmul.f32 %v1733_v55, %v1709_v57 }
 0x5c8   : > { %1850 = vmatmul.mubr.f32.gmra.mxu1 %v1739_v54 }
 0x5c9   : > { %v1742_v20 = vmul.f32 %v1734_v56, %v1710_v30 }
 0x5cb   : > { %1854 = vmatprep.mubr.f32.mxu1 %v1742_v20 }
 0x5cc   : > { %1855 = vmatmul.mubr.f32.gmra.mxu1 %v1741_v58 }
 0x688   : > { %v2452_v60 = vpop.f32.mrf.mxu1 }
 0x68a   : > { %v2453_v62 = vpop.f32.mrf.mxu1 }
 0x68b   : > { %v2454_v63 = vadd.f32 %v2453_v62, %v2452_v60 }
 0x68c   : > { %v2455_v0 = vpop.f32.mrf.mxu1 }
 0x68d   : > { %v1862_v1 = vadd.f32 %v2454_v63, %v3139_v50 }
 0x68e   : > { %v2456_v2 = vpop.f32.mrf.mxu1 }
 0x68f   : > { %v3217_v3 = vadd.f32 %v2363_v31, %v1862_v1  ;;  %v2457_v4 = vadd.f32 %v2456_v2, %v2455_v0 }
 0x691   : > { %1877 = vst.msk [vmem:[#allocation2 + $0x10] sm:$0xff] %vm972_vm2, %v3217_v3  ;;  %v1863_v9 = vadd.f32 %v2457_v4, %v3141_v51  ;;  %1882 = sbr.rel (%p2364_p6) target bundleno = 2255 (0x8cf), region = 108 }
 0x693   : > { %v3222_v10 = vadd.f32 %v2363_v31, %v1863_v9 }
 0x695   : > { %1878 = vst.msk [vmem:[#allocation2 + $0x18] sm:$0xff] %vm972_vm2, %v3222_v10 }
 0x696   : > { %v1894_v50 = vsel %vm972_vm2, %v3222_v10, 0.0  ;;  %v1904_v11 = vmul.f32 %v3222_v10, %v3222_v10  ;;  %v1891_v51 = vsel %vm972_vm2, %v3217_v3, 0.0  ;;  %v1903_v61 = vmul.f32 %v3217_v3, %v3217_v3  ;;  %v2046_v19 = vld [vmem:[%s3347_s18 + $0x38] sm:$0xff]  ;;  %v2045_v21 = vld [vmem:[%s3347_s18 + $0x30] sm:$0xff]  ;;  %v2044_v23 = vld [vmem:[%s3347_s18 + $0x28] sm:$0xff] }
 0x697   : > { %1895 = vadd.xlane.f32.xlu0 %v1894_v50  ;;  %v1888_v15 = vsel %vm972_vm2, %v3208_v35, 0.0  ;;  %v1902_v16 = vmul.f32 %v3208_v35, %v3208_v35  ;;  %v1885_v17 = vsel %vm972_vm2, %v3203_v34, 0.0  ;;  %v1901_v5 = vmul.f32 %v3203_v34, %v3203_v34  ;;  %v2043_v24 = vld [vmem:[%s3347_s18 + $0x20] sm:$0xff]  ;;  %v2042_v25 = vld [vmem:[%s3347_s18 + $0x18] sm:$0xff]  ;;  %v2041_v31 = vld [vmem:[%s3347_s18 + $0x10] sm:$0xff] }
 0x698   : > { %v1914_v13 = vsel %vm972_vm2, %v1904_v11, 0.0  ;;  %v1911_v27 = vsel %vm972_vm2, %v1903_v61, 0.0  ;;  %v2721_v18 = vmov 0.0   ;;  %vm2722_vm5 = vmmov 0   ;;  %v2040_v22 = vld [vmem:[%s3347_s18 + $0x8] sm:$0xff] }
 0x699   : > { %1915 = vadd.xlane.f32.xlu1 %v1914_v13  ;;  %v1908_v6 = vsel %vm972_vm2, %v1902_v16, 0.0  ;;  %v1905_v7 = vsel %vm972_vm2, %v1901_v5, 0.0  ;;  %2532 = vmatprep.subr.mxu0 %v2721_v18  ;;  %v2365_v20 = vld [vmem:[%s3344_s15] ss:$0 sm:$0xff] }
 0x69a   : > { %2543 = vmatprep.subr.mxu1 %v2721_v18  ;;  %2540 = vmatprep.mubr.msk.f32.mxu0 %vm2722_vm5, %v2721_v18  ;;  %v2366_v60 = vld [vmem:[%s3382_s20] ss:$0 sm:$0xff] }
 0x69b   : > { %1892 = vadd.xlane.f32.xlu0 %v1891_v51  ;;  %2559 = vmatprep.mubr.msk.f32.mxu1 %vm2722_vm5, %v2721_v18 }
 0x69c   : > { %2544 = vmatpush3.msra.mxu1 %v2046_v19 }
 0x69d   : > { %1889 = vadd.xlane.f32.xlu1 %v1888_v15  ;;  %2545 = vmatprep.subr.mxu1 %v2721_v18 }
 0x69e   : > { %2546 = vmatpush3.msra.mxu1 %v2045_v21 }
 0x69f   : > { %1912 = vadd.xlane.f32.xlu0 %v1911_v27  ;;  %2547 = vmatprep.subr.mxu1 %v2721_v18 }
 0x6a0   : > { %2548 = vmatpush3.msra.mxu1 %v2044_v23 }
 0x6a1   : > { %1886 = vadd.xlane.f32.xlu1 %v1885_v17  ;;  %2549 = vmatprep.subr.mxu1 %v2721_v18 }
 0x6a2   : > { %2550 = vmatpush3.msra.mxu1 %v2043_v24 }
 0x6a3   : > { %1909 = vadd.xlane.f32.xlu0 %v1908_v6  ;;  %2551 = vmatprep.subr.mxu1 %v2721_v18  ;;  %v2368_v6 = vld [vmem:[%s3384_s29] ss:$0 sm:$0xff] }
 0x6a4   : > { %2552 = vmatpush3.msra.mxu1 %v2042_v25 }
 0x6a5   : > { %1906 = vadd.xlane.f32.xlu1 %v1905_v7  ;;  %2553 = vmatprep.subr.mxu1 %v2721_v18 }
 0x6a6   : > { %2554 = vmatpush3.msra.mxu1 %v2041_v31 }
 0x6a7   : > { %2555 = vmatprep.subr.mxu1 %v2721_v18 }
 0x6a8   : > { %2556 = vmatpush3.msra.mxu1 %v2040_v22 }
 0x6a9   : > { %2557 = vmatprep.subr.mxu1 %v2721_v18 }
 0x720   : > { %v1896_v26 = vpop.xlane.xlu0 %1895 }
 0x721   : > { %v1900_v12 = vmul.f32 0.015625, %v1896_v26 }
 0x722   : > { %v1916_v8 = vpop.xlane.xlu1 %1915 }
 0x723   : > { %v1924_v36 = vmul.f32 %v1900_v12, %v1900_v12  ;;  %v1920_v37 = vmul.f32 0.015625, %v1916_v8  ;;  %v1932_v56 = vsub.f32 %v3222_v10, %v1900_v12 }
 0x724   : > { %v1893_v38 = vpop.xlane.xlu0 %1892 }
 0x725   : > { %v1928_v39 = vsub.f32 %v1920_v37, %v1924_v36  ;;  %v1899_v32 = vmul.f32 0.015625, %v1893_v38 }
 0x726   : > { %v1890_v40 = vpop.xlane.xlu1 %1889 }
 0x727   : > { %v1936_v41 = vadd.f32 1e-05, %v1928_v39  ;;  %v1923_v43 = vmul.f32 %v1899_v32, %v1899_v32  ;;  %v1898_v44 = vmul.f32 0.015625, %v1890_v40  ;;  %v1931_v63 = vsub.f32 %v3217_v3, %v1899_v32 }
 0x728   : > { %v1913_v42 = vpop.xlane.xlu0 %1912 }
 0x729   : > { %2659 = vrsqrt.f32 %v1936_v41  ;;  %v1919_v33 = vmul.f32 0.015625, %v1913_v42  ;;  %v1922_v49 = vmul.f32 %v1898_v44, %v1898_v44  ;;  %v1930_v4 = vsub.f32 %v3208_v35, %v1898_v44  ;;  %v1965_v35 = vld [vmem:[%s3383_s25] sm:$0x3] }
 0x72a   : > { %v1887_v45 = vpop.xlane.xlu1 %1886 }
 0x72b   : > { %v1927_v46 = vsub.f32 %v1919_v33, %v1923_v43  ;;  %v1897_v47 = vmul.f32 0.015625, %v1887_v45 }
 0x72c   : > { %v1910_v48 = vpop.xlane.xlu0 %1909 }
 0x72d   : > { %v1935_v28 = vadd.f32 1e-05, %v1927_v46  ;;  %v1918_v14 = vmul.f32 0.015625, %v1910_v48  ;;  %v1921_v29 = vmul.f32 %v1897_v47, %v1897_v47  ;;  %v1929_v50 = vsub.f32 %v3203_v34, %v1897_v47  ;;  %v2039_v34 = vld [vmem:[%s3347_s18] sm:$0xff] }
 0x72e   : > { %v1907_v52 = vpop.xlane.xlu1 %1906  ;;  %2558 = vmatpush3.msra.mxu1 %v2039_v34 }
 0x72f   : > { %2661 = vrsqrt.f32 %v1935_v28  ;;  %v1926_v59 = vsub.f32 %v1918_v14, %v1922_v49  ;;  %v1917_v53 = vmul.f32 0.015625, %v1907_v52 }
 0x731   : > { %v1934_v54 = vadd.f32 1e-05, %v1926_v59  ;;  %v1925_v55 = vsub.f32 %v1917_v53, %v1921_v29 }
 0x733   : > { %2663 = vrsqrt.f32 %v1934_v54  ;;  %v1933_v30 = vadd.f32 1e-05, %v1925_v55 }
 0x735   : > { %2665 = vrsqrt.f32 %v1933_v30 }
 0x736   : > { %v2660_v57 = vpop.eup %2659 }
 0x737   : > { %v1944_v58 = vmul.f32 %v2660_v57, %v1932_v56 }
 0x739   : > { %v1954_v62 = vmul.f32 %v2365_v20, %v1944_v58 }
 0x73b   : > { %v1964_v0 = vadd.f32 %v2366_v60, %v1954_v62 }
 0x73c   : > { %v2662_v1 = vpop.eup %2661 }
 0x73d   : > { %2533 = vmatpush3.msra.mxu0 %v1964_v0  ;;  %v1943_v2 = vmul.f32 %v2662_v1, %v1931_v63 }
 0x73e   : > { %2534 = vmatprep.subr.mxu0 %v2721_v18 }
 0x73f   : > { %v1953_v9 = vmul.f32 %v2365_v20, %v1943_v2 }
 0x740   : > { %v2664_v10 = vpop.eup %2663 }
 0x741   : > { %v1963_v11 = vadd.f32 %v2366_v60, %v1953_v9  ;;  %v1942_v13 = vmul.f32 %v2664_v10, %v1930_v4 }
 0x742   : > { %v2666_v51 = vpop.eup %2665 }
 0x743   : > { %2535 = vmatpush3.msra.mxu0 %v1963_v11  ;;  %v1952_v61 = vmul.f32 %v2365_v20, %v1942_v13  ;;  %v1941_v15 = vmul.f32 %v2666_v51, %v1929_v50 }
 0x744   : > { %2536 = vmatprep.subr.mxu0 %v2721_v18 }
 0x745   : > { %v1962_v3 = vadd.f32 %v2366_v60, %v1952_v61  ;;  %v1951_v27 = vmul.f32 %v2365_v20, %v1941_v15 }
 0x747   : > { %2537 = vmatpush3.msra.mxu0 %v1962_v3  ;;  %v1961_v16 = vadd.f32 %v2366_v60, %v1951_v27 }
 0x748   : > { %2538 = vmatprep.subr.mxu0 %v2721_v18 }
 0x749   : > { %2539 = vmatpush3.msra.mxu0 %v1961_v16 }
 0x74a   : > { %2541 = vmatmul.mubr.msk.f32.vlgmr.msra.gmra.mxu0 %vm1204_vm4, %v1965_v35 }
 0x80a   : > { %v2035_v17 = vpop.f32.mrf.mxu0 }
 0x80b   : > { %2560 = vmatmul.mubr.msk.f32.vlgmr.msra.gmra.mxu1 %vm972_vm2, %v2035_v17 }
 0x80c   : > { %v2542_v5 = vpop.f32.mrf.mxu0 }
 0x8cb   : > { %v2123_v7 = vpop.f32.mrf.mxu1 }
 0x8cc   : > { %v2124_v19 = vadd.f32 %v2368_v6, %v2123_v7 }
 0x8cd   : > { %v2561_v21 = vpop.f32.mrf.mxu1 }
 0x8ce   : > { %2127 = vst [vmem:[#allocation3] sm:$0x3] %v2124_v19 }
 0x8cf PF: > { %s3385_s4 = sld [smem:[#allocation7_spill]]  ;;  %s2723_s0 = smov [#allocation3]  }
 0x8d0   : > { %s2137_s5 = sshll.u32 %s2723_s0, 4  ;;  %s2138_s5 = int_to_ptr.vmem [resolvable:$true] %s2137_s5 }
 0x8d1   : > { %s2667_s6 = scalar_lea.vmem %s2138_s5, 32  ;;  %p2674_p11 = scmp.lt.s32.totalorder %s2138_s5, %s2138_s5 }
 0x8d2   : > { %p2668_p8 = scmp.ne.s32.totalorder %s2138_s5, %s2667_s6  ;;  %p2675_p12 = scmp.lt.s32.totalorder %s2667_s6, %s2667_s6 }
 0x8d4   : > { %p2676_p13 = por %p2675_p12, %p2674_p11 }
 0x8d5   : > { %s3386_s22 = sadd.s32 4294967295, %s3385_s4  }
 0x8d6   : > { %p3305_p7 = scmp.eq.s32.totalorder %s3386_s22, 1 }
 0x8d8   : > { %p2669_p9 = pnand %p2668_p8, %p3305_p7 }
 0x8da   : > { %p2670_p10 = pneg %p2669_p9 }
 0x8dc   : > { %p2677_p0 = pnand %p2676_p13, %p2670_p10 }
 0x8de   : > { %2680 = shalt.err (!%p2677_p0)
}
 0x8df   : > { %s3388_s17 = sld [smem:[#allocation20_spill]] }
 0x8e5   : > { %2575 = dma.vmem_to_hbm [thread:$0]  (%p3305_p7), %s2138_s5, 32, %s3388_s17, [#allocation4]  }
 0x8e6   : > { %2704 = dma.done.wait (%p3305_p7), [#allocation4], 32  }
 0x8e7   : > { %2706 = vsyncadd (%p3305_p7), [#allocation4], 4294967264 }
 0x8e8 PF: > { %s3389_s16 = sld [smem:[#allocation7_spill]] }
 0x8e9   : > { %s3390_s1 = sld [smem:[#allocation6_spill]] }
 0x8ea   : > { %s3391_s22 = sld [smem:[#allocation8_spill]] }
 0x8ee   : > { %s31_s23 = sadd.s32 1, %s3389_s16  }
 0x8ef   : > { %p28_p1 = scmp.ge.s32.totalorder %s31_s23, 4  }
 0x8f1   :  { %30 = sbr.rel (!%p28_p1) target bundleno = 15 (0xf), region = 172 }
 0x8f6   :  { %2150 = vsyncpa [#allocation4], 1 }
 0x8f7   :  { %2152 = vsyncpa [#allocation4 + $0x1], 1 }

</bundles_post_ra>
